<compile_context>
chip_gen: v5e
topology: v5e:2x2
jax: 0.10.0
libtpu: 0.0.40
codegen_flags: <defaults>
</compile_context>

<pallas_src>
import jax
import jax.numpy as jnp
from jax.experimental import pallas as pl
from jax.experimental.pallas import tpu as pltpu

# ---------------- configuration (small, consistent with the module) ----------
N_HEADS = 2
KQ_DIM = 16
EMB_DIM = 32
CONTEXT_DIM = 24
MLP_HID = 64
BATCH = 2
SQ_LEN = 8        # emb sequence length
SK_LEN = 12       # context sequence length
LN_EPS = 1e-5
HD = N_HEADS * KQ_DIM   # 32

ACT = lambda x: jax.nn.gelu(x, approximate=True)   # mlp_act_fn


# ----------------------------- the Pallas kernel -----------------------------
def block_kernel(emb_ref, ctx_ref, wbig1_ref, wkv_ca_ref, wbig2_ref, w2_ref,
                 par_ref, out_ref):
    H, D, E, M = N_HEADS, KQ_DIM, EMB_DIM, MLP_HID
    R = BATCH * SQ_LEN      # 16 query rows
    Ck = BATCH * SK_LEN     # 24 context rows

    x = emb_ref[...]        # (R, E)
    ctx = ctx_ref[...]      # (Ck, C)
    par = par_ref[...]      # (4, 128) packed per-channel params

    # ---- unpack the (4, 128) parameter slab (static lane slices) -----------
    def dchunk(i):                      # row 0: eight D=16-wide qk-norm affines
        return par[0:1, i * D:(i + 1) * D]
    gq_sa, bq_sa, gk_sa, bk_sa = dchunk(0), dchunk(1), dchunk(2), dchunk(3)
    gq_ca, bq_ca, gk_ca, bk_ca = dchunk(4), dchunk(5), dchunk(6), dchunk(7)

    def echunk(r, i):                   # rows 1..3: E=32-wide chunks
        return par[r:r + 1, i * E:(i + 1) * E]
    bup_sa, ln1_g, ln1_b, bup_ca = echunk(1, 0), echunk(1, 1), echunk(1, 2), echunk(1, 3)
    ln2_g, ln2_b, mlp_b2, ln3_g = echunk(2, 0), echunk(2, 1), echunk(2, 2), echunk(2, 3)
    ln3_b = echunk(3, 0)
    b1 = par[3:4, E:E + M]              # (1, 64) MLP layer-1 bias

    # ---- helpers ------------------------------------------------------------
    def ln(v, g, b):        # LayerNorm over last dim (biased var, eps inside rsqrt)
        mu = jnp.mean(v, axis=-1, keepdims=True)
        c = v - mu
        var = jnp.mean(c * c, axis=-1, keepdims=True)
        return c * jax.lax.rsqrt(var + LN_EPS) * g + b

    def softmax(s):         # row softmax; divide replaced by EUP reciprocal
        s = s - jnp.max(s, axis=-1, keepdims=True)
        p = jnp.exp(s)
        return p * pl.reciprocal(jnp.sum(p, axis=-1, keepdims=True), approx=True)

    def mm(a, b):
        return jnp.dot(a, b, preferred_element_type=jnp.float32)

    def mm_nt(a, b):        # a @ b.T (contract last dims) without materializing b.T
        return jax.lax.dot_general(a, b, (((1,), (1,)), ((), ())),
                                   preferred_element_type=jnp.float32)

    def block_bias(rows, cols, rseg, cseg):
        # 0 where row/col belong to the same batch element, -1e30 otherwise.
        # Batch ids via float floor (avoids vector integer division).
        ri = jax.lax.broadcasted_iota(jnp.int32, (rows, cols), 0).astype(jnp.float32)
        ci = jax.lax.broadcasted_iota(jnp.int32, (rows, cols), 1).astype(jnp.float32)
        rb = jnp.floor((ri + 0.5) * (1.0 / rseg))
        cb = jnp.floor((ci + 0.5) * (1.0 / cseg))
        return jnp.where(rb == cb, 0.0, -1e30).astype(jnp.float32)

    sa_bias = block_bias(R, R, SQ_LEN, SQ_LEN)    # (16, 16)
    ca_bias = block_bias(R, Ck, SQ_LEN, SK_LEN)   # (16, 24)

    # ---- 1) self-attention ---------------------------------------------------
    # One fused projection for all Q/K/V heads: (R, E) @ (E, 3*HD) -> (R, 96).
    qkv = mm(x, wbig1_ref[:, 0:3 * HD])
    heads = []
    for h in range(H):                                    # static unroll, H = 2
        q = ln(qkv[:, h * D:(h + 1) * D], gq_sa, bq_sa)   # 1/sqrt(D) folded in affine
        k = ln(qkv[:, HD + h * D:HD + (h + 1) * D], gk_sa, bk_sa)
        v = qkv[:, 2 * HD + h * D:2 * HD + (h + 1) * D]
        p = softmax(mm_nt(q, k) + sa_bias)
        heads.append(mm(p, v))                            # (R, D)
    sa_ctx = jnp.concatenate(heads, axis=-1)              # (R, HD) lane concat
    sa_out = mm(sa_ctx, wbig2_ref[:, 0:E]) + bup_sa       # single output projection
    # MultiHeadAttention adds its own residual AND the block adds another one.
    x = ln(x + (x + sa_out), ln1_g, ln1_b)

    # ---- 2) cross-attention --------------------------------------------------
    q_all = mm(x, wbig1_ref[:, 3 * HD:4 * HD])            # (R, HD)
    kv = mm(ctx, wkv_ca_ref[...])                         # (Ck, 2*HD)
    heads = []
    for h in range(H):
        q = ln(q_all[:, h * D:(h + 1) * D], gq_ca, bq_ca)
        k = ln(kv[:, h * D:(h + 1) * D], gk_ca, bk_ca)
        v = kv[:, HD + h * D:HD + (h + 1) * D]
        p = softmax(mm_nt(q, k) + ca_bias)
        heads.append(mm(p, v))
    ca_ctx = jnp.concatenate(heads, axis=-1)               # (R, HD)
    ca_out = mm(ca_ctx, wbig2_ref[:, E:2 * E]) + bup_ca
    x = ln(x + ca_out, ln2_g, ln2_b)

    # ---- 3) MLP + final LayerNorm (dropouts are 0.0 -> identity) --------------
    hmid = ACT(mm(x, wbig2_ref[:, 2 * E:2 * E + M]) + b1)  # (R, 64)
    x = mm(hmid, w2_ref[...]) + mlp_b2
    out_ref[...] = ln(x, ln3_g, ln3_b).astype(out_ref.dtype)


# ----------------------------- wrapper ---------------------------------------
@jax.jit
def block_forward(emb, context, kp):
    B, Sq, E = emb.shape
    _, Sk, C = context.shape

    emb_flat = emb.reshape(B * Sq, E)
    ctx_flat = context.reshape(B * Sk, C)

    vmem_spec = pl.BlockSpec(memory_space=pltpu.MemorySpace.VMEM)
    cost = pl.CostEstimate(flops=600_000, transcendentals=3_000,
                           bytes_accessed=56_000)

    out_flat = pl.pallas_call(
        block_kernel,
        out_shape=jax.ShapeDtypeStruct((B * Sq, E), jnp.float32),
        in_specs=[vmem_spec] * 7,
        out_specs=vmem_spec,
        cost_estimate=cost,
    )(emb_flat, ctx_flat,
      kp["wbig1"], kp["wkv_ca"], kp["wbig2"], kp["w2"], kp["par"])
    return out_flat.reshape(B, Sq, E)


# ------------------------- parameter construction ----------------------------
def make_params(key):
    """Natural (PyTorch-like) params; Linear weights stored as (in, out) == weight.T."""
    H, D, E, C, M = N_HEADS, KQ_DIM, EMB_DIM, CONTEXT_DIM, MLP_HID
    keys = iter(jax.random.split(key, 32))
    nrm = lambda shape, s=0.15: s * jax.random.normal(next(keys), shape, jnp.float32)
    return {
        # self-attention (MultiHeadAttention, qkv_bias=False, qk_norm=True)
        "sa_wq": nrm((E, H * D)), "sa_wk": nrm((E, H * D)), "sa_wv": nrm((E, H * D)),
        "sa_wup": nrm((H * D, E)), "sa_bup": nrm((E,), 0.05),
        "sa_gq": 1.0 + nrm((D,), 0.05), "sa_bq": nrm((D,), 0.05),
        "sa_gk": 1.0 + nrm((D,), 0.05), "sa_bk": nrm((D,), 0.05),
        # cross-attention (MultiHeadCrossAttention)
        "ca_wq": nrm((E, H * D)), "ca_wk": nrm((C, H * D)), "ca_wv": nrm((C, H * D)),
        "ca_wup": nrm((H * D, E)), "ca_bup": nrm((E,), 0.05),
        "ca_gq": 1.0 + nrm((D,), 0.05), "ca_bq": nrm((D,), 0.05),
        "ca_gk": 1.0 + nrm((D,), 0.05), "ca_bk": nrm((D,), 0.05),
        # block LayerNorms
        "ln1_g": 1.0 + nrm((E,), 0.05), "ln1_b": nrm((E,), 0.05),
        "ln2_g": 1.0 + nrm((E,), 0.05), "ln2_b": nrm((E,), 0.05),
        "ln3_g": 1.0 + nrm((E,), 0.05), "ln3_b": nrm((E,), 0.05),
        # MLP
        "mlp_w1": nrm((E, M)), "mlp_b1": nrm((M,), 0.05),
        "mlp_w2": nrm((M, E)), "mlp_b2": nrm((E,), 0.05),
    }


def prepare_kernel_params(p):
    """Pack params lane-dense into a handful of arrays (done once, host-side)."""
    D, E, M = KQ_DIM, EMB_DIM, MLP_HID
    inv = 1.0 / jnp.sqrt(jnp.float32(D))

    # (E, 128): [ Wq_sa(32) | Wk_sa(32) | Wv_sa(32) | Wq_ca(32) ] — exactly 128 lanes.
    wbig1 = jnp.concatenate([p["sa_wq"], p["sa_wk"], p["sa_wv"], p["ca_wq"]], axis=1)
    # (C, 64): [ Wk_ca | Wv_ca ]
    wkv_ca = jnp.concatenate([p["ca_wk"], p["ca_wv"]], axis=1)
    # (HD=32, 128): [ wup_sa(32) | wup_ca(32) | mlp_w1(64) ]  (wup inputs == mlp_w1 inputs == 32 rows)
    wbig2 = jnp.concatenate([p["sa_wup"], p["ca_wup"], p["mlp_w1"]], axis=1)
    w2 = p["mlp_w2"]                                          # (64, 32)

    # (4, 128) per-channel parameter slab; q-norm affines pre-scaled by 1/sqrt(D).
    row0 = jnp.concatenate([p["sa_gq"] * inv, p["sa_bq"] * inv, p["sa_gk"], p["sa_bk"],
                            p["ca_gq"] * inv, p["ca_bq"] * inv, p["ca_gk"], p["ca_bk"]])
    row1 = jnp.concatenate([p["sa_bup"], p["ln1_g"], p["ln1_b"], p["ca_bup"]])
    row2 = jnp.concatenate([p["ln2_g"], p["ln2_b"], p["mlp_b2"], p["ln3_g"]])
    row3 = jnp.concatenate([p["ln3_b"], p["mlp_b1"],
                            jnp.zeros((128 - E - M,), jnp.float32)])
    par = jnp.stack([row0, row1, row2, row3], axis=0)         # (4, 128)

    return {"wbig1": wbig1, "wkv_ca": wkv_ca, "wbig2": wbig2, "w2": w2, "par": par}


# ----------------------------- pure-JAX reference ----------------------------
def reference_forward(emb, context, p):
    """Mirrors the PyTorch CrossAttentionBlock.forward exactly."""
    B, Sq, _ = emb.shape
    _, Sk, _ = context.shape
    H, D = N_HEADS, KQ_DIM
    inv = 1.0 / jnp.sqrt(jnp.float32(D))

    def ln(x, g, b):
        m = jnp.mean(x, axis=-1, keepdims=True)
        v = jnp.mean((x - m) ** 2, axis=-1, keepdims=True)
        return (x - m) / jnp.sqrt(v + LN_EPS) * g + b

    def attention(q_in, kv_in, wq, wk, wv, wup, bup, gq, bq, gk, bk):
        Lq, Lk = q_in.shape[1], kv_in.shape[1]
        q = (q_in @ wq).reshape(B, Lq, H, D).transpose(0, 2, 1, 3)
        k = (kv_in @ wk).reshape(B, Lk, H, D).transpose(0, 2, 1, 3)
        v = (kv_in @ wv).reshape(B, Lk, H, D).transpose(0, 2, 1, 3)
        q = ln(q, gq, bq)
        k = ln(k, gk, bk)
        a = jax.nn.softmax(jnp.einsum("bhqd,bhkd->bhqk", q, k) * inv, axis=-1)
        val = jnp.einsum("bhqk,bhkd->bhqd", a, v)
        val = val.transpose(0, 2, 1, 3).reshape(B, Lq, H * D)
        return val @ wup + bup

    # MultiHeadAttention adds its own residual; the block adds another one.
    mha = attention(emb, emb, p["sa_wq"], p["sa_wk"], p["sa_wv"], p["sa_wup"],
                    p["sa_bup"], p["sa_gq"], p["sa_bq"], p["sa_gk"], p["sa_bk"]) + emb
    x = emb + mha
    x = ln(x, p["ln1_g"], p["ln1_b"])
    # MultiHeadCrossAttention has no internal residual; the block adds one.
    mhca = attention(x, context, p["ca_wq"], p["ca_wk"], p["ca_wv"], p["ca_wup"],
                     p["ca_bup"], p["ca_gq"], p["ca_bq"], p["ca_gk"], p["ca_bk"])
    x = x + mhca
    x = ln(x, p["ln2_g"], p["ln2_b"])
    x = ACT(x @ p["mlp_w1"] + p["mlp_b1"]) @ p["mlp_w2"] + p["mlp_b2"]
    return ln(x, p["ln3_g"], p["ln3_b"])


# --------------------------------- main ---------------------------------------
if __name__ == "__main__":
    root = jax.random.PRNGKey(0)
    k_emb, k_ctx, k_par = jax.random.split(root, 3)

    emb = jax.random.normal(k_emb, (BATCH, SQ_LEN, EMB_DIM), jnp.float32)
    context = jax.random.normal(k_ctx, (BATCH, SK_LEN, CONTEXT_DIM), jnp.float32)

    params = make_params(k_par)
    kparams = prepare_kernel_params(params)

    out = block_forward(emb, context, kparams)
    jax.block_until_ready(out)

    ref = reference_forward(emb, context, params)
    assert out.shape == (BATCH, SQ_LEN, EMB_DIM)
    max_err = float(jnp.max(jnp.abs(out - ref)))
    assert jnp.allclose(out, ref, atol=2e-3, rtol=2e-3), \
        f"mismatch vs reference (max abs err {max_err:.3e})"

    print("KERNEL_OK")
</pallas_src>

<mosaic_0001>
module attributes {stable_mosaic.version = 11 : i64} {
  func.func @block_kernel(%arg0: memref<16x32xf32, #tpu.memory_space<vmem>>, %arg1: memref<24x24xf32, #tpu.memory_space<vmem>>, %arg2: memref<32x128xf32, #tpu.memory_space<vmem>>, %arg3: memref<24x64xf32, #tpu.memory_space<vmem>>, %arg4: memref<32x128xf32, #tpu.memory_space<vmem>>, %arg5: memref<64x32xf32, #tpu.memory_space<vmem>>, %arg6: memref<4x128xf32, #tpu.memory_space<vmem>>, %arg7: memref<16x32xf32, #tpu.memory_space<vmem>>) attributes {dimension_semantics = [], scalar_prefetch = 0 : i64, scratch_operands = 0 : i64, tpu.core_type = #tpu.core_type<tc>} {
    %c0 = arith.constant 0 : index
    %c0_0 = arith.constant 0 : index
    %0 = vector.load %arg0[%c0, %c0_0] : memref<16x32xf32, #tpu.memory_space<vmem>>, vector<16x32xf32>
    %c0_1 = arith.constant 0 : index
    %c0_2 = arith.constant 0 : index
    %1 = vector.load %arg1[%c0_1, %c0_2] : memref<24x24xf32, #tpu.memory_space<vmem>>, vector<24x24xf32>
    %c0_3 = arith.constant 0 : index
    %c0_4 = arith.constant 0 : index
    %2 = vector.load %arg6[%c0_3, %c0_4] : memref<4x128xf32, #tpu.memory_space<vmem>>, vector<4x128xf32>
    %3 = vector.extract_strided_slice %2 {offsets = [0, 0], sizes = [1, 16], strides = [1, 1]} : vector<4x128xf32> to vector<1x16xf32>
    %4 = vector.extract_strided_slice %2 {offsets = [0, 16], sizes = [1, 16], strides = [1, 1]} : vector<4x128xf32> to vector<1x16xf32>
    %5 = vector.extract_strided_slice %2 {offsets = [0, 32], sizes = [1, 16], strides = [1, 1]} : vector<4x128xf32> to vector<1x16xf32>
    %6 = vector.extract_strided_slice %2 {offsets = [0, 48], sizes = [1, 16], strides = [1, 1]} : vector<4x128xf32> to vector<1x16xf32>
    %7 = vector.extract_strided_slice %2 {offsets = [0, 64], sizes = [1, 16], strides = [1, 1]} : vector<4x128xf32> to vector<1x16xf32>
    %8 = vector.extract_strided_slice %2 {offsets = [0, 80], sizes = [1, 16], strides = [1, 1]} : vector<4x128xf32> to vector<1x16xf32>
    %9 = vector.extract_strided_slice %2 {offsets = [0, 96], sizes = [1, 16], strides = [1, 1]} : vector<4x128xf32> to vector<1x16xf32>
    %10 = vector.extract_strided_slice %2 {offsets = [0, 112], sizes = [1, 16], strides = [1, 1]} : vector<4x128xf32> to vector<1x16xf32>
    %11 = vector.extract_strided_slice %2 {offsets = [1, 0], sizes = [1, 32], strides = [1, 1]} : vector<4x128xf32> to vector<1x32xf32>
    %12 = vector.extract_strided_slice %2 {offsets = [1, 32], sizes = [1, 32], strides = [1, 1]} : vector<4x128xf32> to vector<1x32xf32>
    %13 = vector.extract_strided_slice %2 {offsets = [1, 64], sizes = [1, 32], strides = [1, 1]} : vector<4x128xf32> to vector<1x32xf32>
    %14 = vector.extract_strided_slice %2 {offsets = [1, 96], sizes = [1, 32], strides = [1, 1]} : vector<4x128xf32> to vector<1x32xf32>
    %15 = vector.extract_strided_slice %2 {offsets = [2, 0], sizes = [1, 32], strides = [1, 1]} : vector<4x128xf32> to vector<1x32xf32>
    %16 = vector.extract_strided_slice %2 {offsets = [2, 32], sizes = [1, 32], strides = [1, 1]} : vector<4x128xf32> to vector<1x32xf32>
    %17 = vector.extract_strided_slice %2 {offsets = [2, 64], sizes = [1, 32], strides = [1, 1]} : vector<4x128xf32> to vector<1x32xf32>
    %18 = vector.extract_strided_slice %2 {offsets = [2, 96], sizes = [1, 32], strides = [1, 1]} : vector<4x128xf32> to vector<1x32xf32>
    %19 = vector.extract_strided_slice %2 {offsets = [3, 0], sizes = [1, 32], strides = [1, 1]} : vector<4x128xf32> to vector<1x32xf32>
    %20 = vector.extract_strided_slice %2 {offsets = [3, 32], sizes = [1, 64], strides = [1, 1]} : vector<4x128xf32> to vector<1x64xf32>
    %21 = tpu.iota {dimensions = array<i32: 0>} : vector<16x16xi32>
    %22 = arith.sitofp %21 : vector<16x16xi32> to vector<16x16xf32>
    %23 = tpu.iota {dimensions = array<i32: 1>} : vector<16x16xi32>
    %24 = arith.sitofp %23 : vector<16x16xi32> to vector<16x16xf32>
    %cst = arith.constant 5.000000e-01 : f32
    %25 = vector.broadcast %cst : f32 to vector<16x16xf32>
    %26 = arith.addf %22, %25 : vector<16x16xf32>
    %cst_5 = arith.constant 1.250000e-01 : f32
    %27 = vector.broadcast %cst_5 : f32 to vector<16x16xf32>
    %28 = arith.mulf %26, %27 : vector<16x16xf32>
    %29 = math.floor %28 : vector<16x16xf32>
    %cst_6 = arith.constant 5.000000e-01 : f32
    %30 = vector.broadcast %cst_6 : f32 to vector<16x16xf32>
    %31 = arith.addf %24, %30 : vector<16x16xf32>
    %cst_7 = arith.constant 1.250000e-01 : f32
    %32 = vector.broadcast %cst_7 : f32 to vector<16x16xf32>
    %33 = arith.mulf %31, %32 : vector<16x16xf32>
    %34 = math.floor %33 : vector<16x16xf32>
    %35 = arith.cmpf oeq, %29, %34 : vector<16x16xf32>
    %cst_8 = arith.constant 0.000000e+00 : f32
    %cst_9 = arith.constant -1.000000e+30 : f32
    %36 = vector.broadcast %cst_8 : f32 to vector<16x16xf32>
    %37 = vector.broadcast %cst_9 : f32 to vector<16x16xf32>
    %38 = arith.select %35, %36, %37 : vector<16x16xi1>, vector<16x16xf32>
    %39 = tpu.iota {dimensions = array<i32: 0>} : vector<16x24xi32>
    %40 = arith.sitofp %39 : vector<16x24xi32> to vector<16x24xf32>
    %41 = tpu.iota {dimensions = array<i32: 1>} : vector<16x24xi32>
    %42 = arith.sitofp %41 : vector<16x24xi32> to vector<16x24xf32>
    %cst_10 = arith.constant 5.000000e-01 : f32
    %43 = vector.broadcast %cst_10 : f32 to vector<16x24xf32>
    %44 = arith.addf %40, %43 : vector<16x24xf32>
    %cst_11 = arith.constant 1.250000e-01 : f32
    %45 = vector.broadcast %cst_11 : f32 to vector<16x24xf32>
    %46 = arith.mulf %44, %45 : vector<16x24xf32>
    %47 = math.floor %46 : vector<16x24xf32>
    %cst_12 = arith.constant 5.000000e-01 : f32
    %48 = vector.broadcast %cst_12 : f32 to vector<16x24xf32>
    %49 = arith.addf %42, %48 : vector<16x24xf32>
    %cst_13 = arith.constant 0.0833333358 : f32
    %50 = vector.broadcast %cst_13 : f32 to vector<16x24xf32>
    %51 = arith.mulf %49, %50 : vector<16x24xf32>
    %52 = math.floor %51 : vector<16x24xf32>
    %53 = arith.cmpf oeq, %47, %52 : vector<16x24xf32>
    %cst_14 = arith.constant 0.000000e+00 : f32
    %cst_15 = arith.constant -1.000000e+30 : f32
    %54 = vector.broadcast %cst_14 : f32 to vector<16x24xf32>
    %55 = vector.broadcast %cst_15 : f32 to vector<16x24xf32>
    %56 = arith.select %53, %54, %55 : vector<16x24xi1>, vector<16x24xf32>
    %c0_16 = arith.constant 0 : index
    %c0_17 = arith.constant 0 : index
    %57 = vector.load %arg2[%c0_16, %c0_17] : memref<32x128xf32, #tpu.memory_space<vmem>>, vector<32x96xf32>
    %cst_18 = arith.constant dense<0.000000e+00> : vector<16x96xf32>
    %58 = tpu.matmul %0, %57, %cst_18 {dimension_numbers = #tpu.dot_dimension_numbers<[1], [0], [0], [1], [0, 0, 1, 1], [], []>} : vector<16x32xf32>, vector<32x96xf32>, vector<16x96xf32> -> vector<16x96xf32>
    %59 = vector.extract_strided_slice %58 {offsets = [0, 0], sizes = [16, 16], strides = [1, 1]} : vector<16x96xf32> to vector<16x16xf32>
    %cst_19 = arith.constant dense<0.000000e+00> : vector<16xf32>
    %60 = vector.multi_reduction <add>, %59, %cst_19 [1] : vector<16x16xf32> to vector<16xf32>
    %61 = vector.shape_cast %60 : vector<16xf32> to vector<16x1xf32>
    %cst_20 = arith.constant 1.600000e+01 : f32
    %62 = vector.broadcast %cst_20 : f32 to vector<16x1xf32>
    %63 = arith.divf %61, %62 : vector<16x1xf32>
    %64 = vector.broadcast %63 : vector<16x1xf32> to vector<16x16xf32>
    %65 = arith.subf %59, %64 : vector<16x16xf32>
    %66 = arith.mulf %65, %65 : vector<16x16xf32>
    %cst_21 = arith.constant dense<0.000000e+00> : vector<16xf32>
    %67 = vector.multi_reduction <add>, %66, %cst_21 [1] : vector<16x16xf32> to vector<16xf32>
    %68 = vector.shape_cast %67 : vector<16xf32> to vector<16x1xf32>
    %cst_22 = arith.constant 1.600000e+01 : f32
    %69 = vector.broadcast %cst_22 : f32 to vector<16x1xf32>
    %70 = arith.divf %68, %69 : vector<16x1xf32>
    %cst_23 = arith.constant 9.99999974E-6 : f32
    %71 = vector.broadcast %cst_23 : f32 to vector<16x1xf32>
    %72 = arith.addf %70, %71 : vector<16x1xf32>
    %73 = math.rsqrt %72 : vector<16x1xf32>
    %74 = vector.broadcast %73 : vector<16x1xf32> to vector<16x16xf32>
    %75 = arith.mulf %65, %74 : vector<16x16xf32>
    %76 = vector.broadcast %3 : vector<1x16xf32> to vector<16x16xf32>
    %77 = arith.mulf %75, %76 : vector<16x16xf32>
    %78 = vector.broadcast %4 : vector<1x16xf32> to vector<16x16xf32>
    %79 = arith.addf %77, %78 : vector<16x16xf32>
    %80 = vector.extract_strided_slice %58 {offsets = [0, 32], sizes = [16, 16], strides = [1, 1]} : vector<16x96xf32> to vector<16x16xf32>
    %cst_24 = arith.constant dense<0.000000e+00> : vector<16xf32>
    %81 = vector.multi_reduction <add>, %80, %cst_24 [1] : vector<16x16xf32> to vector<16xf32>
    %82 = vector.shape_cast %81 : vector<16xf32> to vector<16x1xf32>
    %cst_25 = arith.constant 1.600000e+01 : f32
    %83 = vector.broadcast %cst_25 : f32 to vector<16x1xf32>
    %84 = arith.divf %82, %83 : vector<16x1xf32>
    %85 = vector.broadcast %84 : vector<16x1xf32> to vector<16x16xf32>
    %86 = arith.subf %80, %85 : vector<16x16xf32>
    %87 = arith.mulf %86, %86 : vector<16x16xf32>
    %cst_26 = arith.constant dense<0.000000e+00> : vector<16xf32>
    %88 = vector.multi_reduction <add>, %87, %cst_26 [1] : vector<16x16xf32> to vector<16xf32>
    %89 = vector.shape_cast %88 : vector<16xf32> to vector<16x1xf32>
    %cst_27 = arith.constant 1.600000e+01 : f32
    %90 = vector.broadcast %cst_27 : f32 to vector<16x1xf32>
    %91 = arith.divf %89, %90 : vector<16x1xf32>
    %cst_28 = arith.constant 9.99999974E-6 : f32
    %92 = vector.broadcast %cst_28 : f32 to vector<16x1xf32>
    %93 = arith.addf %91, %92 : vector<16x1xf32>
    %94 = math.rsqrt %93 : vector<16x1xf32>
    %95 = vector.broadcast %94 : vector<16x1xf32> to vector<16x16xf32>
    %96 = arith.mulf %86, %95 : vector<16x16xf32>
    %97 = vector.broadcast %5 : vector<1x16xf32> to vector<16x16xf32>
    %98 = arith.mulf %96, %97 : vector<16x16xf32>
    %99 = vector.broadcast %6 : vector<1x16xf32> to vector<16x16xf32>
    %100 = arith.addf %98, %99 : vector<16x16xf32>
    %101 = vector.extract_strided_slice %58 {offsets = [0, 64], sizes = [16, 16], strides = [1, 1]} : vector<16x96xf32> to vector<16x16xf32>
    %cst_29 = arith.constant dense<0.000000e+00> : vector<16x16xf32>
    %102 = tpu.matmul %79, %100, %cst_29 {dimension_numbers = #tpu.dot_dimension_numbers<[1], [1], [0], [0], [0, 0, 1, 0], [], []>} : vector<16x16xf32>, vector<16x16xf32>, vector<16x16xf32> -> vector<16x16xf32>
    %103 = arith.addf %102, %38 : vector<16x16xf32>
    %cst_30 = arith.constant dense<0xFF800000> : vector<16xf32>
    %104 = vector.multi_reduction <maximumf>, %103, %cst_30 [1] : vector<16x16xf32> to vector<16xf32>
    %105 = vector.shape_cast %104 : vector<16xf32> to vector<16x1xf32>
    %106 = vector.broadcast %105 : vector<16x1xf32> to vector<16x16xf32>
    %107 = arith.subf %103, %106 : vector<16x16xf32>
    %108 = math.exp %107 : vector<16x16xf32>
    %cst_31 = arith.constant dense<0.000000e+00> : vector<16xf32>
    %109 = vector.multi_reduction <add>, %108, %cst_31 [1] : vector<16x16xf32> to vector<16xf32>
    %110 = vector.shape_cast %109 : vector<16xf32> to vector<16x1xf32>
    %111 = tpu.reciprocal %110 {approx = true} : vector<16x1xf32> -> vector<16x1xf32>
    %112 = vector.broadcast %111 : vector<16x1xf32> to vector<16x16xf32>
    %113 = arith.mulf %108, %112 : vector<16x16xf32>
    %cst_32 = arith.constant dense<0.000000e+00> : vector<16x16xf32>
    %114 = tpu.matmul %113, %101, %cst_32 {dimension_numbers = #tpu.dot_dimension_numbers<[1], [0], [0], [1], [0, 0, 1, 1], [], []>} : vector<16x16xf32>, vector<16x16xf32>, vector<16x16xf32> -> vector<16x16xf32>
    %115 = vector.extract_strided_slice %58 {offsets = [0, 16], sizes = [16, 16], strides = [1, 1]} : vector<16x96xf32> to vector<16x16xf32>
    %cst_33 = arith.constant dense<0.000000e+00> : vector<16xf32>
    %116 = vector.multi_reduction <add>, %115, %cst_33 [1] : vector<16x16xf32> to vector<16xf32>
    %117 = vector.shape_cast %116 : vector<16xf32> to vector<16x1xf32>
    %cst_34 = arith.constant 1.600000e+01 : f32
    %118 = vector.broadcast %cst_34 : f32 to vector<16x1xf32>
    %119 = arith.divf %117, %118 : vector<16x1xf32>
    %120 = vector.broadcast %119 : vector<16x1xf32> to vector<16x16xf32>
    %121 = arith.subf %115, %120 : vector<16x16xf32>
    %122 = arith.mulf %121, %121 : vector<16x16xf32>
    %cst_35 = arith.constant dense<0.000000e+00> : vector<16xf32>
    %123 = vector.multi_reduction <add>, %122, %cst_35 [1] : vector<16x16xf32> to vector<16xf32>
    %124 = vector.shape_cast %123 : vector<16xf32> to vector<16x1xf32>
    %cst_36 = arith.constant 1.600000e+01 : f32
    %125 = vector.broadcast %cst_36 : f32 to vector<16x1xf32>
    %126 = arith.divf %124, %125 : vector<16x1xf32>
    %cst_37 = arith.constant 9.99999974E-6 : f32
    %127 = vector.broadcast %cst_37 : f32 to vector<16x1xf32>
    %128 = arith.addf %126, %127 : vector<16x1xf32>
    %129 = math.rsqrt %128 : vector<16x1xf32>
    %130 = vector.broadcast %129 : vector<16x1xf32> to vector<16x16xf32>
    %131 = arith.mulf %121, %130 : vector<16x16xf32>
    %132 = vector.broadcast %3 : vector<1x16xf32> to vector<16x16xf32>
    %133 = arith.mulf %131, %132 : vector<16x16xf32>
    %134 = vector.broadcast %4 : vector<1x16xf32> to vector<16x16xf32>
    %135 = arith.addf %133, %134 : vector<16x16xf32>
    %136 = vector.extract_strided_slice %58 {offsets = [0, 48], sizes = [16, 16], strides = [1, 1]} : vector<16x96xf32> to vector<16x16xf32>
    %cst_38 = arith.constant dense<0.000000e+00> : vector<16xf32>
    %137 = vector.multi_reduction <add>, %136, %cst_38 [1] : vector<16x16xf32> to vector<16xf32>
    %138 = vector.shape_cast %137 : vector<16xf32> to vector<16x1xf32>
    %cst_39 = arith.constant 1.600000e+01 : f32
    %139 = vector.broadcast %cst_39 : f32 to vector<16x1xf32>
    %140 = arith.divf %138, %139 : vector<16x1xf32>
    %141 = vector.broadcast %140 : vector<16x1xf32> to vector<16x16xf32>
    %142 = arith.subf %136, %141 : vector<16x16xf32>
    %143 = arith.mulf %142, %142 : vector<16x16xf32>
    %cst_40 = arith.constant dense<0.000000e+00> : vector<16xf32>
    %144 = vector.multi_reduction <add>, %143, %cst_40 [1] : vector<16x16xf32> to vector<16xf32>
    %145 = vector.shape_cast %144 : vector<16xf32> to vector<16x1xf32>
    %cst_41 = arith.constant 1.600000e+01 : f32
    %146 = vector.broadcast %cst_41 : f32 to vector<16x1xf32>
    %147 = arith.divf %145, %146 : vector<16x1xf32>
    %cst_42 = arith.constant 9.99999974E-6 : f32
    %148 = vector.broadcast %cst_42 : f32 to vector<16x1xf32>
    %149 = arith.addf %147, %148 : vector<16x1xf32>
    %150 = math.rsqrt %149 : vector<16x1xf32>
    %151 = vector.broadcast %150 : vector<16x1xf32> to vector<16x16xf32>
    %152 = arith.mulf %142, %151 : vector<16x16xf32>
    %153 = vector.broadcast %5 : vector<1x16xf32> to vector<16x16xf32>
    %154 = arith.mulf %152, %153 : vector<16x16xf32>
    %155 = vector.broadcast %6 : vector<1x16xf32> to vector<16x16xf32>
    %156 = arith.addf %154, %155 : vector<16x16xf32>
    %157 = vector.extract_strided_slice %58 {offsets = [0, 80], sizes = [16, 16], strides = [1, 1]} : vector<16x96xf32> to vector<16x16xf32>
    %cst_43 = arith.constant dense<0.000000e+00> : vector<16x16xf32>
    %158 = tpu.matmul %135, %156, %cst_43 {dimension_numbers = #tpu.dot_dimension_numbers<[1], [1], [0], [0], [0, 0, 1, 0], [], []>} : vector<16x16xf32>, vector<16x16xf32>, vector<16x16xf32> -> vector<16x16xf32>
    %159 = arith.addf %158, %38 : vector<16x16xf32>
    %cst_44 = arith.constant dense<0xFF800000> : vector<16xf32>
    %160 = vector.multi_reduction <maximumf>, %159, %cst_44 [1] : vector<16x16xf32> to vector<16xf32>
    %161 = vector.shape_cast %160 : vector<16xf32> to vector<16x1xf32>
    %162 = vector.broadcast %161 : vector<16x1xf32> to vector<16x16xf32>
    %163 = arith.subf %159, %162 : vector<16x16xf32>
    %164 = math.exp %163 : vector<16x16xf32>
    %cst_45 = arith.constant dense<0.000000e+00> : vector<16xf32>
    %165 = vector.multi_reduction <add>, %164, %cst_45 [1] : vector<16x16xf32> to vector<16xf32>
    %166 = vector.shape_cast %165 : vector<16xf32> to vector<16x1xf32>
    %167 = tpu.reciprocal %166 {approx = true} : vector<16x1xf32> -> vector<16x1xf32>
    %168 = vector.broadcast %167 : vector<16x1xf32> to vector<16x16xf32>
    %169 = arith.mulf %164, %168 : vector<16x16xf32>
    %cst_46 = arith.constant dense<0.000000e+00> : vector<16x16xf32>
    %170 = tpu.matmul %169, %157, %cst_46 {dimension_numbers = #tpu.dot_dimension_numbers<[1], [0], [0], [1], [0, 0, 1, 1], [], []>} : vector<16x16xf32>, vector<16x16xf32>, vector<16x16xf32> -> vector<16x16xf32>
    %171 = tpu.concatenate %114, %170 in 1 : vector<16x16xf32>, vector<16x16xf32> -> vector<16x32xf32>
    %c0_47 = arith.constant 0 : index
    %c0_48 = arith.constant 0 : index
    %172 = vector.load %arg4[%c0_47, %c0_48] : memref<32x128xf32, #tpu.memory_space<vmem>>, vector<32x32xf32>
    %cst_49 = arith.constant dense<0.000000e+00> : vector<16x32xf32>
    %173 = tpu.matmul %171, %172, %cst_49 {dimension_numbers = #tpu.dot_dimension_numbers<[1], [0], [0], [1], [0, 0, 1, 1], [], []>} : vector<16x32xf32>, vector<32x32xf32>, vector<16x32xf32> -> vector<16x32xf32>
    %174 = vector.broadcast %11 : vector<1x32xf32> to vector<16x32xf32>
    %175 = arith.addf %173, %174 : vector<16x32xf32>
    %176 = arith.addf %0, %175 : vector<16x32xf32>
    %177 = arith.addf %0, %176 : vector<16x32xf32>
    %cst_50 = arith.constant dense<0.000000e+00> : vector<16xf32>
    %178 = vector.multi_reduction <add>, %177, %cst_50 [1] : vector<16x32xf32> to vector<16xf32>
    %179 = vector.shape_cast %178 : vector<16xf32> to vector<16x1xf32>
    %cst_51 = arith.constant 3.200000e+01 : f32
    %180 = vector.broadcast %cst_51 : f32 to vector<16x1xf32>
    %181 = arith.divf %179, %180 : vector<16x1xf32>
    %182 = vector.broadcast %181 : vector<16x1xf32> to vector<16x32xf32>
    %183 = arith.subf %177, %182 : vector<16x32xf32>
    %184 = arith.mulf %183, %183 : vector<16x32xf32>
    %cst_52 = arith.constant dense<0.000000e+00> : vector<16xf32>
    %185 = vector.multi_reduction <add>, %184, %cst_52 [1] : vector<16x32xf32> to vector<16xf32>
    %186 = vector.shape_cast %185 : vector<16xf32> to vector<16x1xf32>
    %cst_53 = arith.constant 3.200000e+01 : f32
    %187 = vector.broadcast %cst_53 : f32 to vector<16x1xf32>
    %188 = arith.divf %186, %187 : vector<16x1xf32>
    %cst_54 = arith.constant 9.99999974E-6 : f32
    %189 = vector.broadcast %cst_54 : f32 to vector<16x1xf32>
    %190 = arith.addf %188, %189 : vector<16x1xf32>
    %191 = math.rsqrt %190 : vector<16x1xf32>
    %192 = vector.broadcast %191 : vector<16x1xf32> to vector<16x32xf32>
    %193 = arith.mulf %183, %192 : vector<16x32xf32>
    %194 = vector.broadcast %12 : vector<1x32xf32> to vector<16x32xf32>
    %195 = arith.mulf %193, %194 : vector<16x32xf32>
    %196 = vector.broadcast %13 : vector<1x32xf32> to vector<16x32xf32>
    %197 = arith.addf %195, %196 : vector<16x32xf32>
    %c0_55 = arith.constant 0 : index
    %c96 = arith.constant 96 : index
    %198 = vector.load %arg2[%c0_55, %c96] : memref<32x128xf32, #tpu.memory_space<vmem>>, vector<32x32xf32>
    %cst_56 = arith.constant dense<0.000000e+00> : vector<16x32xf32>
    %199 = tpu.matmul %197, %198, %cst_56 {dimension_numbers = #tpu.dot_dimension_numbers<[1], [0], [0], [1], [0, 0, 1, 1], [], []>} : vector<16x32xf32>, vector<32x32xf32>, vector<16x32xf32> -> vector<16x32xf32>
    %c0_57 = arith.constant 0 : index
    %c0_58 = arith.constant 0 : index
    %200 = vector.load %arg3[%c0_57, %c0_58] : memref<24x64xf32, #tpu.memory_space<vmem>>, vector<24x64xf32>
    %cst_59 = arith.constant dense<0.000000e+00> : vector<24x64xf32>
    %201 = tpu.matmul %1, %200, %cst_59 {dimension_numbers = #tpu.dot_dimension_numbers<[1], [0], [0], [1], [0, 0, 1, 1], [], []>} : vector<24x24xf32>, vector<24x64xf32>, vector<24x64xf32> -> vector<24x64xf32>
    %202 = vector.extract_strided_slice %199 {offsets = [0, 0], sizes = [16, 16], strides = [1, 1]} : vector<16x32xf32> to vector<16x16xf32>
    %cst_60 = arith.constant dense<0.000000e+00> : vector<16xf32>
    %203 = vector.multi_reduction <add>, %202, %cst_60 [1] : vector<16x16xf32> to vector<16xf32>
    %204 = vector.shape_cast %203 : vector<16xf32> to vector<16x1xf32>
    %cst_61 = arith.constant 1.600000e+01 : f32
    %205 = vector.broadcast %cst_61 : f32 to vector<16x1xf32>
    %206 = arith.divf %204, %205 : vector<16x1xf32>
    %207 = vector.broadcast %206 : vector<16x1xf32> to vector<16x16xf32>
    %208 = arith.subf %202, %207 : vector<16x16xf32>
    %209 = arith.mulf %208, %208 : vector<16x16xf32>
    %cst_62 = arith.constant dense<0.000000e+00> : vector<16xf32>
    %210 = vector.multi_reduction <add>, %209, %cst_62 [1] : vector<16x16xf32> to vector<16xf32>
    %211 = vector.shape_cast %210 : vector<16xf32> to vector<16x1xf32>
    %cst_63 = arith.constant 1.600000e+01 : f32
    %212 = vector.broadcast %cst_63 : f32 to vector<16x1xf32>
    %213 = arith.divf %211, %212 : vector<16x1xf32>
    %cst_64 = arith.constant 9.99999974E-6 : f32
    %214 = vector.broadcast %cst_64 : f32 to vector<16x1xf32>
    %215 = arith.addf %213, %214 : vector<16x1xf32>
    %216 = math.rsqrt %215 : vector<16x1xf32>
    %217 = vector.broadcast %216 : vector<16x1xf32> to vector<16x16xf32>
    %218 = arith.mulf %208, %217 : vector<16x16xf32>
    %219 = vector.broadcast %7 : vector<1x16xf32> to vector<16x16xf32>
    %220 = arith.mulf %218, %219 : vector<16x16xf32>
    %221 = vector.broadcast %8 : vector<1x16xf32> to vector<16x16xf32>
    %222 = arith.addf %220, %221 : vector<16x16xf32>
    %223 = vector.extract_strided_slice %201 {offsets = [0, 0], sizes = [24, 16], strides = [1, 1]} : vector<24x64xf32> to vector<24x16xf32>
    %cst_65 = arith.constant dense<0.000000e+00> : vector<24xf32>
    %224 = vector.multi_reduction <add>, %223, %cst_65 [1] : vector<24x16xf32> to vector<24xf32>
    %225 = vector.shape_cast %224 : vector<24xf32> to vector<24x1xf32>
    %cst_66 = arith.constant 1.600000e+01 : f32
    %226 = vector.broadcast %cst_66 : f32 to vector<24x1xf32>
    %227 = arith.divf %225, %226 : vector<24x1xf32>
    %228 = vector.broadcast %227 : vector<24x1xf32> to vector<24x16xf32>
    %229 = arith.subf %223, %228 : vector<24x16xf32>
    %230 = arith.mulf %229, %229 : vector<24x16xf32>
    %cst_67 = arith.constant dense<0.000000e+00> : vector<24xf32>
    %231 = vector.multi_reduction <add>, %230, %cst_67 [1] : vector<24x16xf32> to vector<24xf32>
    %232 = vector.shape_cast %231 : vector<24xf32> to vector<24x1xf32>
    %cst_68 = arith.constant 1.600000e+01 : f32
    %233 = vector.broadcast %cst_68 : f32 to vector<24x1xf32>
    %234 = arith.divf %232, %233 : vector<24x1xf32>
    %cst_69 = arith.constant 9.99999974E-6 : f32
    %235 = vector.broadcast %cst_69 : f32 to vector<24x1xf32>
    %236 = arith.addf %234, %235 : vector<24x1xf32>
    %237 = math.rsqrt %236 : vector<24x1xf32>
    %238 = vector.broadcast %237 : vector<24x1xf32> to vector<24x16xf32>
    %239 = arith.mulf %229, %238 : vector<24x16xf32>
    %240 = vector.broadcast %9 : vector<1x16xf32> to vector<24x16xf32>
    %241 = arith.mulf %239, %240 : vector<24x16xf32>
    %242 = vector.broadcast %10 : vector<1x16xf32> to vector<24x16xf32>
    %243 = arith.addf %241, %242 : vector<24x16xf32>
    %244 = vector.extract_strided_slice %201 {offsets = [0, 32], sizes = [24, 16], strides = [1, 1]} : vector<24x64xf32> to vector<24x16xf32>
    %cst_70 = arith.constant dense<0.000000e+00> : vector<16x24xf32>
    %245 = tpu.matmul %222, %243, %cst_70 {dimension_numbers = #tpu.dot_dimension_numbers<[1], [1], [0], [0], [0, 0, 1, 0], [], []>} : vector<16x16xf32>, vector<24x16xf32>, vector<16x24xf32> -> vector<16x24xf32>
    %246 = arith.addf %245, %56 : vector<16x24xf32>
    %cst_71 = arith.constant dense<0xFF800000> : vector<16xf32>
    %247 = vector.multi_reduction <maximumf>, %246, %cst_71 [1] : vector<16x24xf32> to vector<16xf32>
    %248 = vector.shape_cast %247 : vector<16xf32> to vector<16x1xf32>
    %249 = vector.broadcast %248 : vector<16x1xf32> to vector<16x24xf32>
    %250 = arith.subf %246, %249 : vector<16x24xf32>
    %251 = math.exp %250 : vector<16x24xf32>
    %cst_72 = arith.constant dense<0.000000e+00> : vector<16xf32>
    %252 = vector.multi_reduction <add>, %251, %cst_72 [1] : vector<16x24xf32> to vector<16xf32>
    %253 = vector.shape_cast %252 : vector<16xf32> to vector<16x1xf32>
    %254 = tpu.reciprocal %253 {approx = true} : vector<16x1xf32> -> vector<16x1xf32>
    %255 = vector.broadcast %254 : vector<16x1xf32> to vector<16x24xf32>
    %256 = arith.mulf %251, %255 : vector<16x24xf32>
    %cst_73 = arith.constant dense<0.000000e+00> : vector<16x16xf32>
    %257 = tpu.matmul %256, %244, %cst_73 {dimension_numbers = #tpu.dot_dimension_numbers<[1], [0], [0], [1], [0, 0, 1, 1], [], []>} : vector<16x24xf32>, vector<24x16xf32>, vector<16x16xf32> -> vector<16x16xf32>
    %258 = vector.extract_strided_slice %199 {offsets = [0, 16], sizes = [16, 16], strides = [1, 1]} : vector<16x32xf32> to vector<16x16xf32>
    %cst_74 = arith.constant dense<0.000000e+00> : vector<16xf32>
    %259 = vector.multi_reduction <add>, %258, %cst_74 [1] : vector<16x16xf32> to vector<16xf32>
    %260 = vector.shape_cast %259 : vector<16xf32> to vector<16x1xf32>
    %cst_75 = arith.constant 1.600000e+01 : f32
    %261 = vector.broadcast %cst_75 : f32 to vector<16x1xf32>
    %262 = arith.divf %260, %261 : vector<16x1xf32>
    %263 = vector.broadcast %262 : vector<16x1xf32> to vector<16x16xf32>
    %264 = arith.subf %258, %263 : vector<16x16xf32>
    %265 = arith.mulf %264, %264 : vector<16x16xf32>
    %cst_76 = arith.constant dense<0.000000e+00> : vector<16xf32>
    %266 = vector.multi_reduction <add>, %265, %cst_76 [1] : vector<16x16xf32> to vector<16xf32>
    %267 = vector.shape_cast %266 : vector<16xf32> to vector<16x1xf32>
    %cst_77 = arith.constant 1.600000e+01 : f32
    %268 = vector.broadcast %cst_77 : f32 to vector<16x1xf32>
    %269 = arith.divf %267, %268 : vector<16x1xf32>
    %cst_78 = arith.constant 9.99999974E-6 : f32
    %270 = vector.broadcast %cst_78 : f32 to vector<16x1xf32>
    %271 = arith.addf %269, %270 : vector<16x1xf32>
    %272 = math.rsqrt %271 : vector<16x1xf32>
    %273 = vector.broadcast %272 : vector<16x1xf32> to vector<16x16xf32>
    %274 = arith.mulf %264, %273 : vector<16x16xf32>
    %275 = vector.broadcast %7 : vector<1x16xf32> to vector<16x16xf32>
    %276 = arith.mulf %274, %275 : vector<16x16xf32>
    %277 = vector.broadcast %8 : vector<1x16xf32> to vector<16x16xf32>
    %278 = arith.addf %276, %277 : vector<16x16xf32>
    %279 = vector.extract_strided_slice %201 {offsets = [0, 16], sizes = [24, 16], strides = [1, 1]} : vector<24x64xf32> to vector<24x16xf32>
    %cst_79 = arith.constant dense<0.000000e+00> : vector<24xf32>
    %280 = vector.multi_reduction <add>, %279, %cst_79 [1] : vector<24x16xf32> to vector<24xf32>
    %281 = vector.shape_cast %280 : vector<24xf32> to vector<24x1xf32>
    %cst_80 = arith.constant 1.600000e+01 : f32
    %282 = vector.broadcast %cst_80 : f32 to vector<24x1xf32>
    %283 = arith.divf %281, %282 : vector<24x1xf32>
    %284 = vector.broadcast %283 : vector<24x1xf32> to vector<24x16xf32>
    %285 = arith.subf %279, %284 : vector<24x16xf32>
    %286 = arith.mulf %285, %285 : vector<24x16xf32>
    %cst_81 = arith.constant dense<0.000000e+00> : vector<24xf32>
    %287 = vector.multi_reduction <add>, %286, %cst_81 [1] : vector<24x16xf32> to vector<24xf32>
    %288 = vector.shape_cast %287 : vector<24xf32> to vector<24x1xf32>
    %cst_82 = arith.constant 1.600000e+01 : f32
    %289 = vector.broadcast %cst_82 : f32 to vector<24x1xf32>
    %290 = arith.divf %288, %289 : vector<24x1xf32>
    %cst_83 = arith.constant 9.99999974E-6 : f32
    %291 = vector.broadcast %cst_83 : f32 to vector<24x1xf32>
    %292 = arith.addf %290, %291 : vector<24x1xf32>
    %293 = math.rsqrt %292 : vector<24x1xf32>
    %294 = vector.broadcast %293 : vector<24x1xf32> to vector<24x16xf32>
    %295 = arith.mulf %285, %294 : vector<24x16xf32>
    %296 = vector.broadcast %9 : vector<1x16xf32> to vector<24x16xf32>
    %297 = arith.mulf %295, %296 : vector<24x16xf32>
    %298 = vector.broadcast %10 : vector<1x16xf32> to vector<24x16xf32>
    %299 = arith.addf %297, %298 : vector<24x16xf32>
    %300 = vector.extract_strided_slice %201 {offsets = [0, 48], sizes = [24, 16], strides = [1, 1]} : vector<24x64xf32> to vector<24x16xf32>
    %cst_84 = arith.constant dense<0.000000e+00> : vector<16x24xf32>
    %301 = tpu.matmul %278, %299, %cst_84 {dimension_numbers = #tpu.dot_dimension_numbers<[1], [1], [0], [0], [0, 0, 1, 0], [], []>} : vector<16x16xf32>, vector<24x16xf32>, vector<16x24xf32> -> vector<16x24xf32>
    %302 = arith.addf %301, %56 : vector<16x24xf32>
    %cst_85 = arith.constant dense<0xFF800000> : vector<16xf32>
    %303 = vector.multi_reduction <maximumf>, %302, %cst_85 [1] : vector<16x24xf32> to vector<16xf32>
    %304 = vector.shape_cast %303 : vector<16xf32> to vector<16x1xf32>
    %305 = vector.broadcast %304 : vector<16x1xf32> to vector<16x24xf32>
    %306 = arith.subf %302, %305 : vector<16x24xf32>
    %307 = math.exp %306 : vector<16x24xf32>
    %cst_86 = arith.constant dense<0.000000e+00> : vector<16xf32>
    %308 = vector.multi_reduction <add>, %307, %cst_86 [1] : vector<16x24xf32> to vector<16xf32>
    %309 = vector.shape_cast %308 : vector<16xf32> to vector<16x1xf32>
    %310 = tpu.reciprocal %309 {approx = true} : vector<16x1xf32> -> vector<16x1xf32>
    %311 = vector.broadcast %310 : vector<16x1xf32> to vector<16x24xf32>
    %312 = arith.mulf %307, %311 : vector<16x24xf32>
    %cst_87 = arith.constant dense<0.000000e+00> : vector<16x16xf32>
    %313 = tpu.matmul %312, %300, %cst_87 {dimension_numbers = #tpu.dot_dimension_numbers<[1], [0], [0], [1], [0, 0, 1, 1], [], []>} : vector<16x24xf32>, vector<24x16xf32>, vector<16x16xf32> -> vector<16x16xf32>
    %314 = tpu.concatenate %257, %313 in 1 : vector<16x16xf32>, vector<16x16xf32> -> vector<16x32xf32>
    %c0_88 = arith.constant 0 : index
    %c32 = arith.constant 32 : index
    %315 = vector.load %arg4[%c0_88, %c32] : memref<32x128xf32, #tpu.memory_space<vmem>>, vector<32x32xf32>
    %cst_89 = arith.constant dense<0.000000e+00> : vector<16x32xf32>
    %316 = tpu.matmul %314, %315, %cst_89 {dimension_numbers = #tpu.dot_dimension_numbers<[1], [0], [0], [1], [0, 0, 1, 1], [], []>} : vector<16x32xf32>, vector<32x32xf32>, vector<16x32xf32> -> vector<16x32xf32>
    %317 = vector.broadcast %14 : vector<1x32xf32> to vector<16x32xf32>
    %318 = arith.addf %316, %317 : vector<16x32xf32>
    %319 = arith.addf %197, %318 : vector<16x32xf32>
    %cst_90 = arith.constant dense<0.000000e+00> : vector<16xf32>
    %320 = vector.multi_reduction <add>, %319, %cst_90 [1] : vector<16x32xf32> to vector<16xf32>
    %321 = vector.shape_cast %320 : vector<16xf32> to vector<16x1xf32>
    %cst_91 = arith.constant 3.200000e+01 : f32
    %322 = vector.broadcast %cst_91 : f32 to vector<16x1xf32>
    %323 = arith.divf %321, %322 : vector<16x1xf32>
    %324 = vector.broadcast %323 : vector<16x1xf32> to vector<16x32xf32>
    %325 = arith.subf %319, %324 : vector<16x32xf32>
    %326 = arith.mulf %325, %325 : vector<16x32xf32>
    %cst_92 = arith.constant dense<0.000000e+00> : vector<16xf32>
    %327 = vector.multi_reduction <add>, %326, %cst_92 [1] : vector<16x32xf32> to vector<16xf32>
    %328 = vector.shape_cast %327 : vector<16xf32> to vector<16x1xf32>
    %cst_93 = arith.constant 3.200000e+01 : f32
    %329 = vector.broadcast %cst_93 : f32 to vector<16x1xf32>
    %330 = arith.divf %328, %329 : vector<16x1xf32>
    %cst_94 = arith.constant 9.99999974E-6 : f32
    %331 = vector.broadcast %cst_94 : f32 to vector<16x1xf32>
    %332 = arith.addf %330, %331 : vector<16x1xf32>
    %333 = math.rsqrt %332 : vector<16x1xf32>
    %334 = vector.broadcast %333 : vector<16x1xf32> to vector<16x32xf32>
    %335 = arith.mulf %325, %334 : vector<16x32xf32>
    %336 = vector.broadcast %15 : vector<1x32xf32> to vector<16x32xf32>
    %337 = arith.mulf %335, %336 : vector<16x32xf32>
    %338 = vector.broadcast %16 : vector<1x32xf32> to vector<16x32xf32>
    %339 = arith.addf %337, %338 : vector<16x32xf32>
    %c0_95 = arith.constant 0 : index
    %c64 = arith.constant 64 : index
    %340 = vector.load %arg4[%c0_95, %c64] : memref<32x128xf32, #tpu.memory_space<vmem>>, vector<32x64xf32>
    %cst_96 = arith.constant dense<0.000000e+00> : vector<16x64xf32>
    %341 = tpu.matmul %339, %340, %cst_96 {dimension_numbers = #tpu.dot_dimension_numbers<[1], [0], [0], [1], [0, 0, 1, 1], [], []>} : vector<16x32xf32>, vector<32x64xf32>, vector<16x64xf32> -> vector<16x64xf32>
    %342 = vector.broadcast %20 : vector<1x64xf32> to vector<16x64xf32>
    %343 = arith.addf %341, %342 : vector<16x64xf32>
    %344 = arith.mulf %343, %343 : vector<16x64xf32>
    %345 = arith.mulf %343, %344 : vector<16x64xf32>
    %cst_97 = arith.constant 4.471500e-02 : f32
    %346 = vector.broadcast %cst_97 : f32 to vector<16x64xf32>
    %347 = arith.mulf %346, %345 : vector<16x64xf32>
    %348 = arith.addf %343, %347 : vector<16x64xf32>
    %cst_98 = arith.constant 0.797884583 : f32
    %349 = vector.broadcast %cst_98 : f32 to vector<16x64xf32>
    %350 = arith.mulf %349, %348 : vector<16x64xf32>
    %351 = math.tanh %350 : vector<16x64xf32>
    %cst_99 = arith.constant 1.000000e+00 : f32
    %352 = vector.broadcast %cst_99 : f32 to vector<16x64xf32>
    %353 = arith.addf %352, %351 : vector<16x64xf32>
    %cst_100 = arith.constant 5.000000e-01 : f32
    %354 = vector.broadcast %cst_100 : f32 to vector<16x64xf32>
    %355 = arith.mulf %354, %353 : vector<16x64xf32>
    %356 = arith.mulf %343, %355 : vector<16x64xf32>
    %c0_101 = arith.constant 0 : index
    %c0_102 = arith.constant 0 : index
    %357 = vector.load %arg5[%c0_101, %c0_102] : memref<64x32xf32, #tpu.memory_space<vmem>>, vector<64x32xf32>
    %cst_103 = arith.constant dense<0.000000e+00> : vector<16x32xf32>
    %358 = tpu.matmul %356, %357, %cst_103 {dimension_numbers = #tpu.dot_dimension_numbers<[1], [0], [0], [1], [0, 0, 1, 1], [], []>} : vector<16x64xf32>, vector<64x32xf32>, vector<16x32xf32> -> vector<16x32xf32>
    %359 = vector.broadcast %17 : vector<1x32xf32> to vector<16x32xf32>
    %360 = arith.addf %358, %359 : vector<16x32xf32>
    %cst_104 = arith.constant dense<0.000000e+00> : vector<16xf32>
    %361 = vector.multi_reduction <add>, %360, %cst_104 [1] : vector<16x32xf32> to vector<16xf32>
    %362 = vector.shape_cast %361 : vector<16xf32> to vector<16x1xf32>
    %cst_105 = arith.constant 3.200000e+01 : f32
    %363 = vector.broadcast %cst_105 : f32 to vector<16x1xf32>
    %364 = arith.divf %362, %363 : vector<16x1xf32>
    %365 = vector.broadcast %364 : vector<16x1xf32> to vector<16x32xf32>
    %366 = arith.subf %360, %365 : vector<16x32xf32>
    %367 = arith.mulf %366, %366 : vector<16x32xf32>
    %cst_106 = arith.constant dense<0.000000e+00> : vector<16xf32>
    %368 = vector.multi_reduction <add>, %367, %cst_106 [1] : vector<16x32xf32> to vector<16xf32>
    %369 = vector.shape_cast %368 : vector<16xf32> to vector<16x1xf32>
    %cst_107 = arith.constant 3.200000e+01 : f32
    %370 = vector.broadcast %cst_107 : f32 to vector<16x1xf32>
    %371 = arith.divf %369, %370 : vector<16x1xf32>
    %cst_108 = arith.constant 9.99999974E-6 : f32
    %372 = vector.broadcast %cst_108 : f32 to vector<16x1xf32>
    %373 = arith.addf %371, %372 : vector<16x1xf32>
    %374 = math.rsqrt %373 : vector<16x1xf32>
    %375 = vector.broadcast %374 : vector<16x1xf32> to vector<16x32xf32>
    %376 = arith.mulf %366, %375 : vector<16x32xf32>
    %377 = vector.broadcast %18 : vector<1x32xf32> to vector<16x32xf32>
    %378 = arith.mulf %376, %377 : vector<16x32xf32>
    %379 = vector.broadcast %19 : vector<1x32xf32> to vector<16x32xf32>
    %380 = arith.addf %378, %379 : vector<16x32xf32>
    %c0_109 = arith.constant 0 : index
    %c0_110 = arith.constant 0 : index
    %381 = vector.load %arg7[%c0_109, %c0_110] : memref<16x32xf32, #tpu.memory_space<vmem>>, vector<16x32xf32>
    tpu.vector_store %arg7[%c0_109, %c0_110], %380 {strides = array<i32>} : memref<16x32xf32, #tpu.memory_space<vmem>>, vector<16x32xf32>,
    return
  }
}

</mosaic_0001>

<bundles_post_ra>
// kernel: block_forward.1
= control target key start
LH: loop header
LB: loop body
LE: loop exit
PB: predicated region body
PF: predicated region fallthrough
CT: control target
= control target key end

     0   :  { %s2417_s0 = inlined_call_operand.vmem [shape: f32[16,32], index: 0, kind: input, shape index: {}]   ;;  %s2418_s1 = inlined_call_operand.vmem [shape: f32[24,24], index: 1, kind: input, shape index: {}]   ;;  %s2419_s2 = inlined_call_operand.vmem [shape: f32[32,128], index: 2, kind: input, shape index: {}]   ;;  %s2420_s3 = inlined_call_operand.vmem [shape: f32[24,64], index: 3, kind: input, shape index: {}]   ;;  %s2421_s4 = inlined_call_operand.vmem [shape: f32[32,128], index: 4, kind: input, shape index: {}]   ;;  %s2422_s5 = inlined_call_operand.vmem [shape: f32[64,32], index: 5, kind: input, shape index: {}]   ;;  %s2423_s6 = inlined_call_operand.vmem [shape: f32[4,128], index: 6, kind: input, shape index: {}]   ;;  %s2424_s7 = inlined_call_operand.hbm [shape: f32[16,32], index: 7, kind: output, shape index: {}]  }
   0x1   :  { %v1802_v0 = vld [vmem:[%s2419_s2 + $0x18] sm:$0xff]  ;;  %v1807_v1 = vld [vmem:[%s2419_s2 + $0x10] sm:$0xff]  ;;  %v1815_v3 = vld [vmem:[%s2419_s2 + $0x8] sm:$0xff] }
   0x2   :  { %83 = vmatpush.msra.mxu0 %v1802_v0  ;;  %v1587_v2 = vpack.i.bf16 %v1807_v1, %v1802_v0  ;;  %v1820_v4 = vld [vmem:[%s2419_s2] sm:$0xff] }
   0x3   :  { %v1592_v5 = vpack.i.bf16 %v1820_v4, %v1815_v3 }
   0x4   :  { %12 = vsyncpa [#allocation3], 0  ;;  %84 = vmatpush.msra.mxu0 %v1807_v1  ;;  %v1829_v6 = vld [vmem:[%s2417_s0] sm:$0xff]  ;;  %vm64_vm0 = vcmask 261120   ;;  %v1837_v7 = vld [vmem:[%s2417_s0 + $0x8] sm:$0xff]  ;;  %s1746_s12 = smov 112  }
   0x5   :  { %s1747_s13 = smov 80   ;;  %s1748_s0 = smov 96   ;;  %vm94_vm1 = vcmask 130048   ;;  %v1749_v22 = vmov 16.0   ;;  %v1916_v60 = vld [vmem:[%s2423_s6] sm:$0xf] }
   0x6   :  { %85 = vmatpush.msra.mxu0 %v1815_v3  ;;  %1627 = vrcp.f32 %v1749_v22  ;;  %v1920_v62 = vperm.slane %v1916_v60, 0  ;;  %s1750_s16 = smov 16   ;;  %s1752_s17 = smov 64  }
   0x7   :  { %s1753_s18 = smov 48  }
   0x8   :  { %86 = vmatpush.msra.mxu0 %v1820_v4 }
   0x9   :  { %1523 = vmatmul.msk.f32.vlgmr.msra.gmra.mxu0 %vm64_vm0, %v1829_v6 }
   0xc   :  { %v1628_v23 = vpop.eup %1627 }
   0xd   :  { %v102_v24 = vmul.f32 16.0, %v1628_v23  ;;  %vm106_vm2 = vweird.f32 %v1628_v23 }
   0xf   :  { %v103_v25 = vsub.f32 1.0, %v102_v24 }
  0x11   :  { %1524 = vmatmul.msk.f32.gmra.mxu0 %vm64_vm0, %v1837_v7  ;;  %v104_v26 = vmul.f32 %v1628_v23, %v103_v25 }
  0x13   :  { %v105_v29 = vadd.f32 %v1628_v23, %v104_v26 }
  0x15   :  { %v1863_v30 = vsel %vm106_vm2, %v1628_v23, %v105_v29 }
  0x86   :  { %v1841_v8 = vpop.f32.mrf.mxu0 }
  0x87   :  { %315 = vrot.lane.b32.xlu2 %v1841_v8, %s1746_s12  ;;  %380 = vrot.lane.b32.xlu1 %v1841_v8, %s1747_s13  ;;  %v95_v53 = vsel %vm94_vm1, %v1841_v8, 0.0 }
  0x8e   :  { %v1847_v9 = vpop.f32.mrf.mxu0 }
  0x8f   :  { %317 = vrot.lane.b32.xlu2 %v1847_v9, %s1746_s12  ;;  %382 = vrot.lane.b32.xlu1 %v1847_v9, %s1747_s13  ;;  %v98_v54 = vsel %vm94_vm1, %v1847_v9, 0.0 }
  0x90   :  { %159 = vrot.lane.b32.xlu0 %v1847_v9, %s1748_s0 }
  0x98   :  { %157 = vrot.lane.b32.xlu0 %v1841_v8, %s1748_s0 }
  0xe1   :  { %v316_v10 = vpop.permute.xlu2 %315 }
  0xe2   :  { %v321_v11 = vsel %vm94_vm1, %v316_v10, 0.0 }
  0xe3   :  { %322 = vadd.xlane.f32.xlu0 %v321_v11 }
  0xe9   :  { %v318_v20 = vpop.permute.xlu2 %317 }
  0xea   :  { %v324_v21 = vsel %vm94_vm1, %v318_v20, 0.0 }
  0xf9   :  { %v381_v12 = vpop.permute.xlu1 %380 }
  0xfa   :  { %v386_v13 = vsel %vm94_vm1, %v381_v12, 0.0 }
  0xfb   :  { %387 = vadd.xlane.f32.xlu2 %v386_v13 }
 0x101   :  { %v383_v14 = vpop.permute.xlu1 %382 }
 0x102   :  { %v160_v15 = vpop.permute.xlu0 %159  ;;  %v389_v16 = vsel %vm94_vm1, %v383_v14, 0.0 }
 0x103   :  { %390 = vadd.xlane.f32.xlu2 %v389_v16  ;;  %v166_v17 = vsel %vm94_vm1, %v160_v15, 0.0 }
 0x104   :  { %167 = vadd.xlane.f32.xlu0 %v166_v17 }
 0x10a   :  { %v158_v18 = vpop.permute.xlu0 %157 }
 0x10b   :  { %v163_v19 = vsel %vm94_vm1, %v158_v18, 0.0 }
 0x10c   :  { %164 = vadd.xlane.f32.xlu1 %v163_v19 }
 0x114   :  { %325 = vadd.xlane.f32.xlu1 %v324_v21 }
 0x156   :  { %v323_v28 = vpop.xlane.xlu0 %322 }
 0x157   :  { %v327_v38 = vmul.f32 %v323_v28, %v1863_v30 }
 0x159   :  { %v1881_v41 = vsub.f32 %v1841_v8, %v327_v38 }
 0x15b   :  { %v331_v46 = vmul.f32 %v1881_v41, %v1881_v41 }
 0x16e   :  { %v388_v27 = vpop.xlane.xlu2 %387 }
 0x16f   :  { %v392_v44 = vmul.f32 %v388_v27, %v1863_v30 }
 0x171   :  { %v1895_v48 = vsub.f32 %v1841_v8, %v392_v44 }
 0x173   :  { %v396_v51 = vmul.f32 %v1895_v48, %v1895_v48 }
 0x176   :  { %v391_v31 = vpop.xlane.xlu2 %390 }
 0x177   :  { %v393_v32 = vmul.f32 %v391_v31, %v1863_v30  ;;  %v168_v33 = vpop.xlane.xlu0 %167 }
 0x178   :  { %v170_v34 = vmul.f32 %v168_v33, %v1863_v30 }
 0x179   :  { %v1868_v35 = vsub.f32 %v1847_v9, %v393_v32 }
 0x17a   :  { %v1871_v36 = vsub.f32 %v1847_v9, %v170_v34 }
 0x17b   :  { %v397_v37 = vmul.f32 %v1868_v35, %v1868_v35 }
 0x17c   :  { %v174_v39 = vmul.f32 %v1871_v36, %v1871_v36 }
 0x17d   :  { %402 = vrot.lane.b32.xlu1 %v397_v37, %s1747_s13 }
 0x17e   :  { %179 = vrot.lane.b32.xlu2 %v174_v39, %s1748_s0 }
 0x17f   :  { %v165_v40 = vpop.xlane.xlu1 %164 }
 0x180   :  { %v169_v42 = vmul.f32 %v165_v40, %v1863_v30 }
 0x182   :  { %v1885_v43 = vsub.f32 %v1841_v8, %v169_v42 }
 0x184   :  { %v173_v45 = vmul.f32 %v1885_v43, %v1885_v43 }
 0x186   :  { %177 = vrot.lane.b32.xlu0 %v173_v45, %s1748_s0  ;;  %335 = vrot.lane.b32.xlu2 %v331_v46, %s1746_s12 }
 0x187   :  { %v326_v47 = vpop.xlane.xlu1 %325 }
 0x188   :  { %v328_v49 = vmul.f32 %v326_v47, %v1863_v30 }
 0x18a   :  { %v1899_v50 = vsub.f32 %v1847_v9, %v328_v49 }
 0x18c   :  { %v332_v52 = vmul.f32 %v1899_v50, %v1899_v50 }
 0x18e   :  { %400 = vrot.lane.b32.xlu0 %v396_v51, %s1747_s13  ;;  %337 = vrot.lane.b32.xlu1 %v332_v52, %s1746_s12 }
 0x1b8   :  { %96 = vadd.xlane.f32.xlu0 %v95_v53 }
 0x1c0   :  { %99 = vadd.xlane.f32.xlu0 %v98_v54 }
 0x1d8   :  { %v180_v55 = vpop.permute.xlu2 %179 }
 0x1d9   :  { %v186_v56 = vsel %vm94_vm1, %v180_v55, 0.0 }
 0x1da   :  { %187 = vadd.xlane.f32.xlu2 %v186_v56 }
 0x1e0   :  { %v336_v57 = vpop.permute.xlu2 %335 }
 0x1e1   :  { %v341_v58 = vsel %vm94_vm1, %v336_v57, 0.0 }
 0x1e2   :  { %342 = vadd.xlane.f32.xlu0 %v341_v58 }
 0x1ef   :  { %v403_v59 = vpop.permute.xlu1 %402 }
 0x1f0   :  { %v409_v61 = vsel %vm94_vm1, %v403_v59, 0.0 }
 0x1f1   :  { %410 = vadd.xlane.f32.xlu2 %v409_v61 }
 0x1f6   :  { %373 = vrot.lane.b32.xlu0 %v1920_v62, %s1750_s16 }
 0x1f8   :  { %v178_v63 = vpop.permute.xlu0 %177 }
 0x1f9   :  { %v183_v10 = vsel %vm94_vm1, %v178_v63, 0.0 }
 0x1fa   :  { %184 = vadd.xlane.f32.xlu1 %v183_v10 }
 0x200   :  { %v401_v11 = vpop.permute.xlu0 %400  ;;  %v338_v20 = vpop.permute.xlu1 %337 }
 0x201   :  { %v406_v12 = vsel %vm94_vm1, %v401_v11, 0.0  ;;  %v344_v22 = vsel %vm94_vm1, %v338_v20, 0.0 }
 0x202   :  { %407 = vadd.xlane.f32.xlu1 %v406_v12 }
 0x21b   :  { %150 = vrot.lane.b32.xlu1 %v1920_v62, %s1746_s12 }
 0x22b   :  { %v97_v13 = vpop.xlane.xlu0 %96 }
 0x22c   :  { %v108_v14 = vmul.f32 %v1863_v30, %v97_v13 }
 0x22e   :  { %v1930_v15 = vsub.f32 %v1841_v8, %v108_v14 }
 0x230   :  { %v112_v16 = vmul.f32 %v1930_v15, %v1930_v15 }
 0x232   :  { %v114_v17 = vsel %vm94_vm1, %v112_v16, 0.0 }
 0x233   :  { %115 = vadd.xlane.f32.xlu2 %v114_v17  ;;  %v100_v18 = vpop.xlane.xlu0 %99 }
 0x234   :  { %v109_v19 = vmul.f32 %v1863_v30, %v100_v18 }
 0x236   :  { %v1937_v21 = vsub.f32 %v1847_v9, %v109_v19 }
 0x238   :  { %v113_v23 = vmul.f32 %v1937_v21, %v1937_v21 }
 0x23a   :  { %v117_v24 = vsel %vm94_vm1, %v113_v23, 0.0 }
 0x23b   :  { %345 = vadd.xlane.f32.xlu2 %v344_v22 }
 0x243   :  { %118 = vadd.xlane.f32.xlu2 %v117_v24 }
 0x24d   :  { %v188_v28 = vpop.xlane.xlu2 %187 }
 0x24e   :  { %v190_v29 = vmul.f32 %v188_v28, %v1863_v30 }
 0x250   :  { %v192_v31 = vadd.f32 1e-05, %v190_v29 }
 0x252   :  { %vm209_vm11 = vweird.f32 %v192_v31 }
 0x255   :  { %v343_v25 = vpop.xlane.xlu0 %342 }
 0x256   :  { %v347_v26 = vmul.f32 %v343_v25, %v1863_v30 }
 0x258   :  { %v349_v27 = vadd.f32 1e-05, %v347_v26 }
 0x25a   :  { %1629 = vrsqrt.f32 %v349_v27  ;;  %vm357_vm7 = vweird.f32 %v349_v27 }
 0x25b   :  { %1631 = vrsqrt.f32 %v192_v31 }
 0x260   :  { %v1630_v33 = vpop.eup %1629 }
 0x261   :  { %v352_v38 = vmul.f32 %v1630_v33, %v349_v27  ;;  %v1632_v42 = vpop.eup %1631  ;;  %vm358_vm4 = vweird.f32 %v1630_v33 }
 0x262   :  { %v204_v51 = vmul.f32 %v1632_v42, %v192_v31  ;;  %vm359_vm8 = vmor %vm357_vm7, %vm358_vm4  ;;  %vm210_vm9 = vweird.f32 %v1632_v42 }
 0x263   :  { %v353_v39 = vmul.f32 %v1630_v33, %v352_v38  ;;  %vm211_vm12 = vmor %vm209_vm11, %vm210_vm9 }
 0x264   :  { %v411_v32 = vpop.xlane.xlu2 %410  ;;  %v205_v55 = vmul.f32 %v1632_v42, %v204_v51 }
 0x265   :  { %v413_v34 = vmul.f32 %v411_v32, %v1863_v30  ;;  %v354_v46 = vmul.f32 0.5, %v353_v39 }
 0x266   :  { %v206_v11 = vmul.f32 0.5, %v205_v55 }
 0x267   :  { %v415_v37 = vadd.f32 1e-05, %v413_v34  ;;  %v355_v53 = vsub.f32 1.5, %v354_v46 }
 0x268   :  { %v1949_v18 = vpop.permute.xlu0 %373  ;;  %v207_v19 = vsub.f32 1.5, %v206_v11 }
 0x269   :  { %1633 = vrsqrt.f32 %v415_v37  ;;  %v356_v61 = vmul.f32 %v1630_v33, %v355_v53  ;;  %vm432_vm5 = vweird.f32 %v415_v37 }
 0x26a   :  { %v208_v27 = vmul.f32 %v1632_v42, %v207_v19 }
 0x26b   :  { %v360_v17 = vsel %vm359_vm8, %v1630_v33, %v356_v61 }
 0x26c   :  { %v371_v25 = vmul.f32 %v360_v17, %v1881_v41  ;;  %v212_v33 = vsel %vm211_vm12, %v1632_v42, %v208_v27 }
 0x26d   :  { %v185_v40 = vpop.xlane.xlu1 %184 }
 0x26e   :  { %v189_v44 = vmul.f32 %v185_v40, %v1863_v30  ;;  %v376_v32 = vmul.f32 %v1949_v18, %v371_v25  ;;  %v214_v40 = vmul.f32 %v212_v33, %v1871_v36 }
 0x26f   :  { %v1634_v45 = vpop.eup %1633 }
 0x270   :  { %v427_v47 = vmul.f32 %v1634_v45, %v415_v37  ;;  %v191_v49 = vadd.f32 1e-05, %v189_v44  ;;  %vm433_vm3 = vweird.f32 %v1634_v45  ;;  %v378_v41 = vadd.f32 %v376_v32, %v1920_v62 }
 0x271   :  { %vm434_vm6 = vmor %vm432_vm5, %vm433_vm3  ;;  %v216_v42 = vmul.f32 %v214_v40, %v1920_v62 }
 0x272   :  { %v428_v52 = vmul.f32 %v1634_v45, %v427_v47  ;;  %1635 = vrsqrt.f32 %v191_v49  ;;  %vm199_vm13 = vweird.f32 %v191_v49 }
 0x274   :  { %v429_v54 = vmul.f32 0.5, %v428_v52 }
 0x275   :  { %v408_v56 = vpop.xlane.xlu1 %407 }
 0x276   :  { %v430_v57 = vsub.f32 1.5, %v429_v54  ;;  %v412_v58 = vmul.f32 %v408_v56, %v1863_v30 }
 0x278   :  { %v1636_v59 = vpop.eup %1635  ;;  %v431_v63 = vmul.f32 %v1634_v45, %v430_v57  ;;  %v414_v10 = vadd.f32 1e-05, %v412_v58 }
 0x279   :  { %v194_v12 = vmul.f32 %v1636_v59, %v191_v49  ;;  %vm200_vm10 = vweird.f32 %v1636_v59 }
 0x27a   :  { %v435_v13 = vsel %vm434_vm6, %v1634_v45, %v431_v63  ;;  %1637 = vrsqrt.f32 %v414_v10  ;;  %vm201_vm14 = vmor %vm199_vm13, %vm200_vm10  ;;  %vm422_vm2 = vweird.f32 %v414_v10 }
 0x27b   :  { %v195_v14 = vmul.f32 %v1636_v59, %v194_v12  ;;  %v437_v16 = vmul.f32 %v435_v13, %v1868_v35 }
 0x27d   :  { %v196_v20 = vmul.f32 0.5, %v195_v14  ;;  %v439_v22 = vmul.f32 %v437_v16, %v1949_v18 }
 0x27f   :  { %v197_v23 = vsub.f32 1.5, %v196_v20  ;;  %v441_v24 = vadd.f32 %v439_v22, %v1920_v62 }
 0x280   :  { %v1638_v26 = vpop.eup %1637 }
 0x281   :  { %v198_v28 = vmul.f32 %v1636_v59, %v197_v23  ;;  %v417_v29 = vmul.f32 %v1638_v26, %v414_v10  ;;  %452 = vrot.lane.b32.xlu1 %v441_v24, %s1747_s13  ;;  %vm423_vm15 = vweird.f32 %v1638_v26 }
 0x282   :  { %vm424_vm3 = vmor %vm422_vm2, %vm423_vm15  ;;  %vm700_vm15 = vcmask 195584  }
 0x283   :  { %v418_v35 = vmul.f32 %v1638_v26, %v417_v29  ;;  %v202_v34 = vsel %vm201_vm14, %v1636_v59, %v198_v28 }
 0x284   :  { %v213_v39 = vmul.f32 %v202_v34, %v1885_v43 }
 0x285   :  { %v419_v37 = vmul.f32 0.5, %v418_v35 }
 0x286   :  { %v215_v45 = vmul.f32 %v213_v39, %v1920_v62 }
 0x287   :  { %v420_v38 = vsub.f32 1.5, %v419_v37 }
 0x289   :  { %v421_v44 = vmul.f32 %v1638_v26, %v420_v38  ;;  %444 = vrot.lane.b32.xlu1 %v378_v41, %s1746_s12 }
 0x28b   :  { %v425_v31 = vsel %vm424_vm3, %v1638_v26, %v421_v44 }
 0x28c   :  { %v436_v43 = vmul.f32 %v425_v31, %v1895_v48 }
 0x28d   :  { %v1962_v46 = vpop.permute.xlu1 %150 }
 0x28e   :  { %v217_v47 = vadd.f32 %v215_v45, %v1962_v46  ;;  %v218_v49 = vadd.f32 %v216_v42, %v1962_v46  ;;  %v438_v36 = vmul.f32 %v436_v43, %v1949_v18  ;;  %v33_v43 = vlaneseq }
 0x290   :  { %221 = vrot.lane.b32.xlu0 %v217_v47, %s1748_s0  ;;  %223 = vrot.lane.b32.xlu2 %v218_v49, %s1748_s0  ;;  %v440_v51 = vadd.f32 %v438_v36, %v1920_v62  ;;  %v34_v36 = vshrl.u32 %v33_v43, 7 }
 0x298   :  { %450 = vrot.lane.b32.xlu0 %v440_v51, %s1747_s13  ;;  %v36_v51 = vcvt.s32.f32 %v34_v36 }
 0x2a6   :  { %v116_v52 = vpop.xlane.xlu2 %115 }
 0x2a7   :  { %v120_v13 = vmul.f32 %v116_v52, %v1863_v30 }
 0x2a9   :  { %v122_v14 = vadd.f32 1e-05, %v120_v13 }
 0x2ab   :  { %vm130_vm8 = vweird.f32 %v122_v14 }
 0x2ae   :  { %v346_v53 = vpop.xlane.xlu2 %345 }
 0x2af   :  { %v348_v54 = vmul.f32 %v346_v53, %v1863_v30  ;;  %v41_v53 = vadd.f32 0.5, %v36_v51 }
 0x2b1   :  { %v350_v55 = vadd.f32 1e-05, %v348_v54 }
 0x2b3   :  { %1639 = vrsqrt.f32 %v350_v55  ;;  %vm367_vm5 = vweird.f32 %v350_v55 }
 0x2b4   :  { %1641 = vrsqrt.f32 %v122_v14 }
 0x2b6   :  { %v119_v16 = vpop.xlane.xlu2 %118 }
 0x2b7   :  { %v121_v17 = vmul.f32 %v119_v16, %v1863_v30 }
 0x2b9   :  { %v1640_v56 = vpop.eup %1639  ;;  %v123_v19 = vadd.f32 1e-05, %v121_v17 }
 0x2ba   :  { %v362_v57 = vmul.f32 %v1640_v56, %v350_v55  ;;  %vm368_vm4 = vweird.f32 %v1640_v56  ;;  %v1642_v20 = vpop.eup %1641  ;;  %v35_v55 = vadd.s32 8, %v34_v36 }
 0x2bb   :  { %vm369_vm6 = vmor %vm367_vm5, %vm368_vm4  ;;  %1643 = vrsqrt.f32 %v123_v19  ;;  %v125_v22 = vmul.f32 %v1642_v20, %v122_v14  ;;  %vm131_vm7 = vweird.f32 %v1642_v20  ;;  %vm140_vm11 = vweird.f32 %v123_v19 }
 0x2bc   :  { %v363_v58 = vmul.f32 %v1640_v56, %v362_v57  ;;  %vm132_vm9 = vmor %vm130_vm8, %vm131_vm7  ;;  %v37_v57 = vcvt.s32.f32 %v35_v55 }
 0x2bd   :  { %v126_v23 = vmul.f32 %v1642_v20, %v125_v22 }
 0x2be   :  { %v364_v48 = vmul.f32 0.5, %v363_v58 }
 0x2bf   :  { %v127_v25 = vmul.f32 0.5, %v126_v23 }
 0x2c0   :  { %v365_v59 = vsub.f32 1.5, %v364_v48 }
 0x2c1   :  { %v1644_v24 = vpop.eup %1643  ;;  %v128_v27 = vsub.f32 1.5, %v127_v25 }
 0x2c2   :  { %v366_v61 = vmul.f32 %v1640_v56, %v365_v59  ;;  %v135_v26 = vmul.f32 %v1644_v24, %v123_v19  ;;  %vm141_vm10 = vweird.f32 %v1644_v24  ;;  %v42_v59 = vadd.f32 0.5, %v37_v57 }
 0x2c3   :  { %v129_v35 = vmul.f32 %v1642_v20, %v128_v27  ;;  %vm142_vm12 = vmor %vm140_vm11, %vm141_vm10 }
 0x2c4   :  { %v370_v63 = vsel %vm369_vm6, %v1640_v56, %v366_v61  ;;  %v136_v28 = vmul.f32 %v1644_v24, %v135_v26  ;;  %v1995_v56 = vmul.f32 0.125, %v41_v53  ;;  %v2001_v61 = vmul.f32 0.125, %v42_v59 }
 0x2c5   :  { %v372_v10 = vmul.f32 %v370_v63, %v1899_v50  ;;  %v133_v33 = vsel %vm132_vm9, %v1642_v20, %v129_v35  ;;  %v1751_v63 = vmov -1e+30  }
 0x2c6   :  { %v137_v32 = vmul.f32 0.5, %v136_v28  ;;  %v144_v37 = vmul.f32 %v133_v33, %v1930_v15  ;;  %v45_v58 = vfloor.f32 %v1995_v56 }
 0x2c7   :  { %v377_v11 = vmul.f32 %v1949_v18, %v372_v10 }
 0x2c8   :  { %v138_v34 = vsub.f32 1.5, %v137_v32  ;;  %v147_v41 = vmul.f32 %v1920_v62, %v144_v37 }
 0x2c9   :  { %v379_v12 = vadd.f32 %v377_v11, %v1920_v62  ;;  %v46_v11 = vfloor.f32 %v2001_v61 }
 0x2ca   :  { %v139_v38 = vmul.f32 %v1644_v24, %v138_v34  ;;  %v153_v44 = vadd.f32 %v1962_v46, %v147_v41 }
 0x2cb   :  { %446 = vrot.lane.b32.xlu0 %v379_v12, %s1746_s12 }
 0x2cc   :  { %v143_v39 = vsel %vm142_vm12, %v1644_v24, %v139_v38 }
 0x2cd   :  { %v145_v31 = vmul.f32 %v143_v39, %v1937_v21  ;;  %v39_v21 = vand.u32 127, %v33_v43 }
 0x2cf   :  { %v148_v45 = vmul.f32 %v1920_v62, %v145_v31  ;;  %v40_v52 = vcvt.s32.f32 %v39_v21 }
 0x2d1   :  { %v154_v15 = vadd.f32 %v1962_v46, %v148_v45  ;;  %v1993_v54 = vadd.f32 0.5, %v40_v52 }
 0x2d3   :  { %v48_v46 = vmul.f32 0.125, %v1993_v54 }
 0x2d5   :  { %v49_v48 = vfloor.f32 %v48_v46 }
 0x2d7   :  { %vm50_vm13 = vcmp.eq.f32.partialorder %v45_v58, %v49_v48  ;;  %vm51_vm14 = vcmp.eq.f32.partialorder %v46_v11, %v49_v48 }
 0x2d8   :  { %v52_v10 = vsel %vm50_vm13, 0.0, %v1751_v63  ;;  %v53_v16 = vsel %vm51_vm14, 0.0, %v1751_v63 }
 0x2ea   :  { %v224_v50 = vpop.permute.xlu2 %223 }
 0x2eb   :  { %1525 = vmatpush.xpose.msk.msra.mxu1 %vm94_vm1, %v224_v50  ;;  %v1577_v50 = vpack.i.bf16 %v1841_v8, %v1847_v9 }
 0x2f3   :  { %v453_v29 = vpop.permute.xlu1 %452 }
 0x2f4   :  { %1531 = vmatpush.xpose.msk.msra.mxu3 %vm94_vm1, %v453_v29 }
 0x2fb   :  { %v445_v47 = vpop.permute.xlu1 %444 }
 0x302   :  { %v222_v40 = vpop.permute.xlu0 %221 }
 0x303   :  { %1526 = vmatpush.xpose.msk.msra.mxu1 %vm94_vm1, %v222_v40 }
 0x306   :  { %1527 = vmatmul.msk.f32.vlgmr.msra.gmra.mxu1 %vm94_vm1, %v153_v44 }
 0x30a   :  { %v451_v42 = vpop.permute.xlu0 %450 }
 0x30b   :  { %1532 = vmatpush.xpose.msk.msra.mxu3 %vm94_vm1, %v451_v42 }
 0x30e   :  { %1528 = vmatmul.msk.f32.gmra.mxu1 %vm94_vm1, %v154_v15  ;;  %1533 = vmatmul.msk.f32.vlgmr.msra.gmra.mxu3 %vm94_vm1, %v445_v47 }
 0x33d   :  { %v447_v49 = vpop.permute.xlu0 %446 }
 0x33e   :  { %1534 = vmatmul.msk.f32.gmra.mxu3 %vm94_vm1, %v447_v49 }
 0x383   :  { %v252_v12 = vpop.f32.mrf.mxu1 }
 0x384   :  { %v253_v13 = vadd.f32 %v252_v12, %v52_v10 }
 0x386   :  { %v258_v14 = vsel %vm94_vm1, %v253_v13, -inf }
 0x387   :  { %259 = vmax.xlane.f32.xlu1 %v258_v14 }
 0x38b   :  { %v255_v17 = vpop.f32.mrf.mxu1 }
 0x38c   :  { %v256_v19 = vadd.f32 %v255_v17, %v53_v16 }
 0x38e   :  { %v261_v20 = vsel %vm94_vm1, %v256_v19, -inf }
 0x38f   :  { %262 = vmax.xlane.f32.xlu2 %v261_v20 }
 0x391   :  { %v479_v22 = vpop.f32.mrf.mxu3 }
 0x392   :  { %v480_v23 = vadd.f32 %v479_v22, %v52_v10 }
 0x394   :  { %v485_v24 = vsel %vm94_vm1, %v480_v23, -inf }
 0x395   :  { %486 = vmax.xlane.f32.xlu0 %v485_v24  ;;  %v2028_v24 = vld [vmem:[%s2421_s4 + $0x18] sm:$0xff] }
 0x396   :  { %575 = vmatpush.msrb.mxu0 %v2028_v24 }
 0x3a9   :  { %1578 = vrot.lane.b32.xlu0 %v1577_v50, %s1752_s17 }
 0x3c1   :  { %v482_v25 = vpop.f32.mrf.mxu3 }
 0x3c2   :  { %v483_v26 = vadd.f32 %v482_v25, %v53_v16  ;;  %v2039_v25 = vld [vmem:[%s2421_s4 + $0x8] sm:$0xff] }
 0x3c4   :  { %v488_v27 = vsel %vm94_vm1, %v483_v26, -inf }
 0x3c5   :  { %489 = vmax.xlane.f32.xlu1 %v488_v27  ;;  %v2047_v27 = vld [vmem:[%s2421_s4] sm:$0xff] }
 0x3fa   :  { %v260_v28 = vpop.xlane.xlu1 %259 }
 0x3fb   :  { %v264_v29 = vsub.f32 %v253_v13, %v260_v28  ;;  %v699_v28 = vld [vmem:[%s2420_s3 + $0x10] sm:$0xff] }
 0x3fc   :  { %723 = vmatpush.msrb.mxu3 %v699_v28 }
 0x3fd   :  { %v266_v35 = vmul.f32 1.442695, %v264_v29  ;;  %v698_v29 = vld [vmem:[%s2420_s3 + $0x8] sm:$0xff] }
 0x3fe   :  { %724 = vmatpush.msrb.mxu3 %v698_v29 }
 0x3ff   :  { %1645 = vpow2.f32 %v266_v35  ;;  %v697_v35 = vld [vmem:[%s2420_s3] sm:$0xff]  ;;  %s1511_s3 = sshll.u32 %s2424_s7, 4  ;;  %s1512_s3 = int_to_ptr.hbm [resolvable:$true] %s1511_s3 }
 0x400   :  { %725 = vmatpush.msrb.mxu3 %v697_v35 }
 0x402   :  { %v263_v32 = vpop.xlane.xlu2 %262 }
 0x403   :  { %v265_v33 = vsub.f32 %v256_v19, %v263_v32  ;;  %v29_v32 = vld [vmem:[%s2418_s1] sm:$0xff] }
 0x404   :  { %1541 = vmatmul.msk.f32.vlgmr.msrb.gmra.mxu3 %vm700_vm15, %v29_v32 }
 0x405   :  { %v1646_v34 = vpop.eup %1645  ;;  %v268_v37 = vmul.f32 1.442695, %v265_v33  ;;  %v30_v33 = vld [vmem:[%s2418_s1 + $0x8] sm:$0xff] }
 0x406   :  { %v270_v38 = vsel %vm94_vm1, %v1646_v34, 0.0 }
 0x407   :  { %1647 = vpow2.f32 %v268_v37  ;;  %271 = vadd.xlane.f32.xlu2 %v270_v38 }
 0x408   :  { %v487_v8 = vpop.xlane.xlu0 %486 }
 0x409   :  { %v491_v9 = vsub.f32 %v480_v23, %v487_v8 }
 0x40b   :  { %v493_v41 = vmul.f32 1.442695, %v491_v9 }
 0x40c   :  { %1542 = vmatmul.msk.f32.gmra.mxu3 %vm700_vm15, %v30_v33 }
 0x40d   :  { %v1648_v39 = vpop.eup %1647  ;;  %1649 = vpow2.f32 %v493_v41  ;;  %v2076_v41 = vperm.slane %v1916_v60, 1 }
 0x40e   :  { %v273_v40 = vsel %vm94_vm1, %v1648_v39, 0.0 }
 0x40f   :  { %274 = vadd.xlane.f32.xlu1 %v273_v40 }
 0x413   :  { %v1650_v44 = vpop.eup %1649 }
 0x414   :  { %v497_v31 = vsel %vm94_vm1, %v1650_v44, 0.0 }
 0x415   :  { %498 = vadd.xlane.f32.xlu2 %v497_v31 }
 0x41b   :  { %v1579_v45 = vpop.permute.xlu0 %1578 }
 0x41c   :  { %v1580_v42 = vunpack.i.l.bf16 %v1579_v45  ;;  %v1581_v15 = vunpack.i.h.bf16 %v1579_v45 }
 0x41e   :  { %306 = vmatpush.msra.mxu2 %v1580_v42 }
 0x420   :  { %307 = vmatpush.msra.mxu2 %v1581_v15 }
 0x428   :  { %1583 = vrot.lane.b32.xlu1 %v1577_v50, %s1753_s18  ;;  %v2033_v50 = vld [vmem:[%s2421_s4 + $0x10] sm:$0xff] }
 0x429   :  { %576 = vmatpush.msrb.mxu0 %v2033_v50 }
 0x42b   :  { %577 = vmatpush.msrb.mxu0 %v2039_v25 }
 0x42d   :  { %578 = vmatpush.msrb.mxu0 %v2047_v27 }
 0x438   :  { %v490_v47 = vpop.xlane.xlu1 %489 }
 0x439   :  { %v492_v49 = vsub.f32 %v483_v26, %v490_v47 }
 0x43b   :  { %v495_v43 = vmul.f32 1.442695, %v492_v49 }
 0x43d   :  { %1651 = vpow2.f32 %v495_v43 }
 0x443   :  { %v1652_v36 = vpop.eup %1651 }
 0x444   :  { %v500_v21 = vsel %vm94_vm1, %v1652_v36, 0.0 }
 0x445   :  { %501 = vadd.xlane.f32.xlu2 %v500_v21 }
 0x47a   :  { %v272_v51 = vpop.xlane.xlu2 %271 }
 0x47b   :  { %1653 = vrcp.f32 %v272_v51 }
 0x481   :  { %v1654_v52 = vpop.eup %1653 }
 0x482   :  { %v275_v53 = vpop.xlane.xlu1 %274  ;;  %v278_v55 = vmul.f32 %v1654_v52, %v1646_v34  ;;  %v31_v34 = vld [vmem:[%s2418_s1 + $0x10] sm:$0xff]  ;;  %s1754_s1 = smov 32  }
 0x483   :  { %1655 = vrcp.f32 %v275_v53  ;;  %1543 = vmatmul.msk.f32.gmra.mxu3 %vm700_vm15, %v31_v34 }
 0x484   :  { %1529 = vmatmul.msk.f32.vlgmr.msra.gmra.mxu2 %vm94_vm1, %v278_v55 }
 0x487   :  { %v2086_v43 = vpop.f32.mrf.mxu3 }
 0x488   :  { %v499_v48 = vpop.xlane.xlu2 %498 }
 0x489   :  { %v1656_v46 = vpop.eup %1655  ;;  %1657 = vrcp.f32 %v499_v48 }
 0x48a   :  { %v279_v57 = vmul.f32 %v1656_v46, %v1648_v39 }
 0x48c   :  { %1530 = vmatmul.msk.f32.gmra.mxu2 %vm94_vm1, %v279_v57 }
 0x48f   :  { %v1658_v10 = vpop.eup %1657 }
 0x490   :  { %v505_v14 = vmul.f32 %v1658_v10, %v1650_v44 }
 0x49a   :  { %v1584_v59 = vpop.permute.xlu1 %1583 }
 0x49b   :  { %v1585_v12 = vunpack.i.l.bf16 %v1584_v59  ;;  %v1586_v13 = vunpack.i.h.bf16 %v1584_v59 }
 0x49d   :  { %533 = vmatpush.msrb.mxu2 %v1585_v12 }
 0x49f   :  { %534 = vmatpush.msrb.mxu2 %v1586_v13 }
 0x4a0   :  { %1535 = vmatmul.msk.f32.vlgmr.msrb.gmra.mxu2 %vm94_vm1, %v505_v14 }
 0x4b8   :  { %v502_v16 = vpop.xlane.xlu2 %501 }
 0x4b9   :  { %1659 = vrcp.f32 %v502_v16 }
 0x4bf   :  { %v1660_v17 = vpop.eup %1659 }
 0x4c0   :  { %v506_v19 = vmul.f32 %v1660_v17, %v1652_v36  ;;  %v2090_v36 = vpop.f32.mrf.mxu3 }
 0x4c2   :  { %1536 = vmatmul.msk.f32.gmra.mxu2 %vm94_vm1, %v506_v19 }
 0x507   :  { %v309_v20 = vpop.f32.mrf.mxu2 }
 0x50f   :  { %v312_v22 = vpop.f32.mrf.mxu2 }
 0x523   :  { %v536_v23 = vpop.f32.mrf.mxu2 }
 0x524   :  { %544 = vrot.lane.b32.xlu0 %v536_v23, %s1750_s16 }
 0x545   :  { %v539_v26 = vpop.f32.mrf.mxu2 }
 0x546   :  { %546 = vrot.lane.b32.xlu2 %v539_v26, %s1750_s16 }
 0x596   :  { %v545_v37 = vpop.permute.xlu0 %544 }
 0x597   :  { %v550_v38 = vsel %vm94_vm1, %v309_v20, %v545_v37 }
 0x598   :  { %1537 = vmatmul.msk.f32.vlgmr.msrb.gmra.mxu0 %vm64_vm0, %v550_v38 }
 0x5a0   :  { %v547_v8 = vpop.permute.xlu2 %546 }
 0x5a1   :  { %v551_v9 = vsel %vm94_vm1, %v312_v22, %v547_v8 }
 0x5a2   :  { %1538 = vmatmul.msk.f32.gmra.mxu0 %vm64_vm0, %v551_v9 }
 0x615   :  { %v580_v39 = vpop.f32.mrf.mxu0 }
 0x616   :  { %v581_v40 = vadd.f32 %v580_v39, %v2076_v41 }
 0x618   :  { %v586_v44 = vadd.f32 %v581_v40, %v1829_v6 }
 0x61a   :  { %v588_v31 = vadd.f32 %v586_v44, %v1829_v6  ;;  %v2096_v6 = vpop.f32.mrf.mxu3 }
 0x61b   :  { %v1602_v56 = vpack.i.bf16 %v2090_v36, %v2096_v6 }
 0x61c   :  { %v590_v45 = vsel %vm64_vm0, %v588_v31, 0.0 }
 0x61d   :  { %591 = vadd.xlane.f32.xlu0 %v590_v45 }
 0x61f   :  { %v583_v42 = vpop.f32.mrf.mxu0 }
 0x620   :  { %v584_v15 = vadd.f32 %v583_v42, %v2076_v41 }
 0x622   :  { %v587_v47 = vadd.f32 %v584_v15, %v1837_v7 }
 0x624   :  { %v589_v49 = vadd.f32 %v587_v47, %v1837_v7  ;;  %v1755_v7 = vmov 32.0  }
 0x625   :  { %1661 = vrcp.f32 %v1755_v7 }
 0x626   :  { %v593_v60 = vsel %vm64_vm0, %v589_v49, 0.0 }
 0x627   :  { %594 = vadd.xlane.f32.xlu1 %v593_v60 }
 0x62b   :  { %v1662_v21 = vpop.eup %1661 }
 0x62c   :  { %v597_v51 = vmul.f32 32.0, %v1662_v21  ;;  %vm601_vm2 = vweird.f32 %v1662_v21 }
 0x62e   :  { %v598_v52 = vsub.f32 1.0, %v597_v51 }
 0x630   :  { %v599_v53 = vmul.f32 %v1662_v21, %v598_v52 }
 0x631   :  { %642 = vrot.lane.b32.xlu0 %v2076_v41, %s1748_s0 }
 0x632   :  { %v600_v55 = vadd.f32 %v1662_v21, %v599_v53 }
 0x634   :  { %v2102_v46 = vsel %vm601_vm2, %v1662_v21, %v600_v55 }
 0x640   :  { %1588 = vrot.lane.b32.xlu1 %v1587_v2, %s1754_s1 }
 0x648   :  { %1037 = vrot.lane.b32.xlu1 %v2096_v6, %s1746_s12 }
 0x650   :  { %1033 = vrot.lane.b32.xlu1 %v2086_v43, %s1746_s12 }
 0x690   :  { %v592_v0 = vpop.xlane.xlu0 %591 }
 0x691   :  { %v603_v1 = vmul.f32 %v2102_v46, %v592_v0 }
 0x693   :  { %v605_v2 = vsub.f32 %v588_v31, %v603_v1 }
 0x695   :  { %v607_v57 = vmul.f32 %v605_v2, %v605_v2 }
 0x697   :  { %v609_v48 = vsel %vm64_vm0, %v607_v57, 0.0 }
 0x698   :  { %610 = vadd.xlane.f32.xlu2 %v609_v48 }
 0x69a   :  { %v595_v59 = vpop.xlane.xlu1 %594 }
 0x69b   :  { %v604_v10 = vmul.f32 %v2102_v46, %v595_v59 }
 0x69d   :  { %v606_v12 = vsub.f32 %v589_v49, %v604_v10 }
 0x69f   :  { %v608_v13 = vmul.f32 %v606_v12, %v606_v12 }
 0x6a1   :  { %v612_v14 = vsel %vm64_vm0, %v608_v13, 0.0 }
 0x6a2   :  { %613 = vadd.xlane.f32.xlu0 %v612_v14 }
 0x6b0   :  { %1593 = vrot.lane.b32.xlu2 %v1592_v5, %s1754_s1  ;;  %v643_v5 = vpop.permute.xlu0 %642 }
 0x6b2   :  { %v1589_v16 = vpop.permute.xlu1 %1588 }
 0x6b3   :  { %v1590_v17 = vunpack.i.l.bf16 %v1589_v16  ;;  %v1591_v19 = vunpack.i.h.bf16 %v1589_v16 }
 0x6b5   :  { %686 = vmatpush.msrb.mxu1 %v1590_v17 }
 0x6b6   :  { %647 = vrot.lane.b32.xlu0 %v2076_v41, %s1752_s17 }
 0x6b7   :  { %687 = vmatpush.msrb.mxu1 %v1591_v19 }
 0x6ba   :  { %v1038_v20 = vpop.permute.xlu1 %1037 }
 0x6bb   :  { %v1048_v22 = vsel %vm94_vm1, %v1038_v20, 0.0 }
 0x6bc   :  { %1049 = vadd.xlane.f32.xlu1 %v1048_v22 }
 0x6be   :  { %1035 = vrot.lane.b32.xlu0 %v2090_v36, %s1746_s12 }
 0x6c2   :  { %v1034_v23 = vpop.permute.xlu1 %1033 }
 0x6c3   :  { %v1042_v26 = vsel %vm94_vm1, %v1034_v23, 0.0 }
 0x6e8   :  { %1043 = vadd.xlane.f32.xlu0 %v1042_v26 }
 0x70b   :  { %v611_v3 = vpop.xlane.xlu2 %610 }
 0x70c   :  { %v615_v4 = vmul.f32 %v611_v3, %v2102_v46 }
 0x70e   :  { %v617_v28 = vadd.f32 1e-05, %v615_v4 }
 0x710   :  { %1663 = vrsqrt.f32 %v617_v28  ;;  %vm625_vm4 = vweird.f32 %v617_v28 }
 0x713   :  { %v1594_v29 = vpop.permute.xlu2 %1593 }
 0x714   :  { %v1595_v35 = vunpack.i.l.bf16 %v1594_v29  ;;  %v1596_v32 = vunpack.i.h.bf16 %v1594_v29 }
 0x715   :  { %v614_v33 = vpop.xlane.xlu0 %613 }
 0x716   :  { %v1664_v34 = vpop.eup %1663  ;;  %v616_v37 = vmul.f32 %v614_v33, %v2102_v46  ;;  %688 = vmatpush.msrb.mxu1 %v1595_v35 }
 0x717   :  { %v620_v38 = vmul.f32 %v1664_v34, %v617_v28  ;;  %vm626_vm3 = vweird.f32 %v1664_v34 }
 0x718   :  { %v618_v8 = vadd.f32 1e-05, %v616_v37  ;;  %689 = vmatpush.msrb.mxu1 %v1596_v32  ;;  %vm627_vm5 = vmor %vm625_vm4, %vm626_vm3 }
 0x719   :  { %v621_v9 = vmul.f32 %v1664_v34, %v620_v38 }
 0x71a   :  { %1665 = vrsqrt.f32 %v618_v8  ;;  %vm635_vm7 = vweird.f32 %v618_v8 }
 0x71b   :  { %v622_v39 = vmul.f32 0.5, %v621_v9  ;;  %v793_v9 = vsel %vm94_vm1, %v2090_v36, 0.0 }
 0x71d   :  { %v623_v40 = vsub.f32 1.5, %v622_v39 }
 0x71f   :  { %v624_v44 = vmul.f32 %v1664_v34, %v623_v40 }
 0x720   :  { %v1666_v31 = vpop.eup %1665 }
 0x721   :  { %v630_v45 = vmul.f32 %v1666_v31, %v618_v8  ;;  %v628_v42 = vsel %vm627_vm5, %v1664_v34, %v624_v44  ;;  %vm636_vm6 = vweird.f32 %v1666_v31  ;;  %v796_v8 = vsel %vm94_vm1, %v2096_v6, 0.0 }
 0x722   :  { %v639_v47 = vmul.f32 %v628_v42, %v605_v2  ;;  %vm637_vm8 = vmor %vm635_vm7, %vm636_vm6 }
 0x723   :  { %v631_v15 = vmul.f32 %v1666_v31, %v630_v45 }
 0x724   :  { %v645_v7 = vmul.f32 %v643_v5, %v639_v47 }
 0x725   :  { %v632_v49 = vmul.f32 0.5, %v631_v15 }
 0x727   :  { %v633_v60 = vsub.f32 1.5, %v632_v49 }
 0x728   :  { %v648_v21 = vpop.permute.xlu0 %647 }
 0x729   :  { %v634_v51 = vmul.f32 %v1666_v31, %v633_v60  ;;  %v2120_v52 = vadd.f32 %v648_v21, %v645_v7 }
 0x72b   :  { %v638_v53 = vsel %vm637_vm8, %v1666_v31, %v634_v51  ;;  %1539 = vmatmul.msk.f32.vlgmr.msrb.gmra.mxu1 %vm64_vm0, %v2120_v52 }
 0x72c   :  { %v640_v55 = vmul.f32 %v638_v53, %v606_v12 }
 0x72e   :  { %v646_v0 = vmul.f32 %v643_v5, %v640_v55 }
 0x72f   :  { %v1050_v1 = vpop.xlane.xlu1 %1049 }
 0x730   :  { %v2124_v57 = vadd.f32 %v648_v21, %v646_v0  ;;  %v1053_v2 = vmul.f32 %v1050_v1, %v1863_v30  ;;  %v1036_v48 = vpop.permute.xlu0 %1035 }
 0x731   :  { %v1045_v59 = vsel %vm94_vm1, %v1036_v48, 0.0 }
 0x732   :  { %v2129_v10 = vsub.f32 %v2096_v6, %v1053_v2  ;;  %1046 = vadd.xlane.f32.xlu2 %v1045_v59  ;;  %v790_v59 = vsel %vm94_vm1, %v2086_v43, 0.0 }
 0x733   :  { %1540 = vmatmul.msk.f32.gmra.mxu1 %vm64_vm0, %v2124_v57 }
 0x734   :  { %v1059_v13 = vmul.f32 %v2129_v10, %v2129_v10 }
 0x736   :  { %1067 = vrot.lane.b32.xlu0 %v1059_v13, %s1746_s12 }
 0x75b   :  { %v1044_v12 = vpop.xlane.xlu0 %1043 }
 0x75c   :  { %v1051_v14 = vmul.f32 %v1044_v12, %v1863_v30 }
 0x75e   :  { %v2138_v16 = vsub.f32 %v2086_v43, %v1051_v14 }
 0x760   :  { %v1057_v17 = vmul.f32 %v2138_v16, %v2138_v16 }
 0x762   :  { %1063 = vrot.lane.b32.xlu1 %v1057_v17, %s1746_s12 }
 0x7a5   :  { %v1047_v19 = vpop.xlane.xlu2 %1046 }
 0x7a6   :  { %v1052_v20 = vmul.f32 %v1047_v19, %v1863_v30 }
 0x7a8   :  { %v2145_v22 = vsub.f32 %v2090_v36, %v1052_v20  ;;  %v2147_v23 = vpop.f32.mrf.mxu1  ;;  %v1068_v4 = vpop.permute.xlu0 %1067 }
 0x7a9   :  { %v1078_v28 = vsel %vm94_vm1, %v1068_v4, 0.0  ;;  %v736_v1 = vsel %vm94_vm1, %v2147_v23, 0.0 }
 0x7aa   :  { %v1058_v26 = vmul.f32 %v2145_v22, %v2145_v22 }
 0x7ac   :  { %1065 = vrot.lane.b32.xlu2 %v1058_v26, %s1746_s12 }
 0x7b0   :  { %v2152_v3 = vpop.f32.mrf.mxu1 }
 0x7b1   :  { %970 = vrot.lane.b32.xlu0 %v2152_v3, %s1746_s12  ;;  %v739_v39 = vsel %vm94_vm1, %v2152_v3, 0.0 }
 0x7b4   :  { %968 = vrot.lane.b32.xlu2 %v2147_v23, %s1746_s12 }
 0x7d4   :  { %v1064_v5 = vpop.permute.xlu1 %1063 }
 0x7d5   :  { %v1072_v29 = vsel %vm94_vm1, %v1064_v5, 0.0 }
 0x7db   :  { %1079 = vadd.xlane.f32.xlu0 %v1078_v28 }
 0x7dd   :  { %1073 = vadd.xlane.f32.xlu2 %v1072_v29 }
 0x7ef   :  { %856 = vrot.lane.b32.xlu0 %v1920_v62, %s1754_s1 }
 0x7f5   :  { %785 = vrot.lane.b32.xlu2 %v1920_v62, %s1753_s18 }
 0x7f7   :  { %780 = vrot.lane.b32.xlu0 %v1920_v62, %s1752_s17 }
 0x806   :  { %v1066_v35 = vpop.permute.xlu2 %1065 }
 0x807   :  { %v1075_v32 = vsel %vm94_vm1, %v1066_v35, 0.0 }
 0x808   :  { %1076 = vadd.xlane.f32.xlu1 %v1075_v32 }
 0x80e   :  { %v969_v33 = vpop.permute.xlu2 %968 }
 0x80f   :  { %v974_v34 = vsel %vm94_vm1, %v969_v33, 0.0 }
 0x81e   :  { %975 = vadd.xlane.f32.xlu2 %v974_v34 }
 0x823   :  { %v971_v37 = vpop.permute.xlu0 %970 }
 0x824   :  { %v977_v38 = vsel %vm94_vm1, %v971_v37, 0.0 }
 0x825   :  { %978 = vadd.xlane.f32.xlu1 %v977_v38 }
 0x82d   :  { %797 = vadd.xlane.f32.xlu1 %v796_v8 }
 0x835   :  { %794 = vadd.xlane.f32.xlu1 %v793_v9 }
 0x84e   :  { %1026 = vrot.lane.b32.xlu1 %v1920_v62, %s1747_s13  ;;  %v1080_v21 = vpop.xlane.xlu0 %1079 }
 0x84f   :  { %v1083_v51 = vmul.f32 %v1080_v21, %v1863_v30 }
 0x850   :  { %v1074_v40 = vpop.xlane.xlu2 %1073 }
 0x851   :  { %v1086_v53 = vadd.f32 1e-05, %v1083_v51  ;;  %v1081_v4 = vmul.f32 %v1074_v40, %v1863_v30 }
 0x853   :  { %1667 = vrsqrt.f32 %v1086_v53  ;;  %vm1113_vm10 = vweird.f32 %v1086_v53  ;;  %v1084_v5 = vadd.f32 1e-05, %v1081_v4 }
 0x855   :  { %1669 = vrsqrt.f32 %v1084_v5  ;;  %vm1093_vm13 = vweird.f32 %v1084_v5 }
 0x858   :  { %v2177_v44 = vpop.permute.xlu2 %785 }
 0x859   :  { %v1668_v55 = vpop.eup %1667 }
 0x85a   :  { %v1108_v0 = vmul.f32 %v1668_v55, %v1086_v53  ;;  %vm1114_vm9 = vweird.f32 %v1668_v55 }
 0x85b   :  { %vm1115_vm11 = vmor %vm1113_vm10, %vm1114_vm9  ;;  %v1670_v29 = vpop.eup %1669 }
 0x85c   :  { %v1109_v2 = vmul.f32 %v1668_v55, %v1108_v0  ;;  %v1088_v32 = vmul.f32 %v1670_v29, %v1084_v5  ;;  %vm1094_vm12 = vweird.f32 %v1670_v29 }
 0x85d   :  { %vm1095_vm14 = vmor %vm1093_vm13, %vm1094_vm12 }
 0x85e   :  { %v1110_v48 = vmul.f32 0.5, %v1109_v2  ;;  %v1089_v33 = vmul.f32 %v1670_v29, %v1088_v32 }
 0x860   :  { %v1111_v13 = vsub.f32 1.5, %v1110_v48  ;;  %v1090_v38 = vmul.f32 0.5, %v1089_v33 }
 0x861   :  { %v2200_v20 = vpop.permute.xlu0 %856 }
 0x862   :  { %v1112_v12 = vmul.f32 %v1668_v55, %v1111_v13 }
 0x864   :  { %v1116_v14 = vsel %vm1115_vm11, %v1668_v55, %v1112_v12 }
 0x865   :  { %v1119_v17 = vmul.f32 %v1116_v14, %v2129_v10 }
 0x867   :  { %v1122_v19 = vmul.f32 %v1119_v17, %v2177_v44 }
 0x869   :  { %v1125_v26 = vadd.f32 %v1122_v19, %v2200_v20 }
 0x878   :  { %740 = vadd.xlane.f32.xlu1 %v739_v39  ;;  %v1091_v39 = vsub.f32 1.5, %v1090_v38 }
 0x87b   :  { %v1077_v31 = vpop.xlane.xlu1 %1076 }
 0x87c   :  { %v1082_v28 = vmul.f32 %v1077_v31, %v1863_v30  ;;  %v2211_v31 = vpop.permute.xlu0 %780 }
 0x87e   :  { %v1085_v35 = vadd.f32 1e-05, %v1082_v28 }
 0x880   :  { %1671 = vrsqrt.f32 %v1085_v35  ;;  %vm1103_vm3 = vweird.f32 %v1085_v35 }
 0x886   :  { %v1672_v8 = vpop.eup %1671 }
 0x887   :  { %v1098_v40 = vmul.f32 %v1672_v8, %v1085_v35  ;;  %vm1104_vm2 = vweird.f32 %v1672_v8 }
 0x888   :  { %vm1105_vm4 = vmor %vm1103_vm3, %vm1104_vm2 }
 0x891   :  { %v976_v45 = vpop.xlane.xlu2 %975 }
 0x892   :  { %v980_v42 = vmul.f32 %v976_v45, %v1863_v30 }
 0x894   :  { %v2181_v15 = vsub.f32 %v2147_v23, %v980_v42  ;;  %v1092_v42 = vmul.f32 %v1670_v29, %v1091_v39 }
 0x896   :  { %v984_v47 = vmul.f32 %v2181_v15, %v2181_v15 }
 0x898   :  { %988 = vrot.lane.b32.xlu0 %v984_v47, %s1746_s12  ;;  %v979_v62 = vpop.xlane.xlu1 %978  ;;  %v1099_v47 = vmul.f32 %v1672_v8, %v1098_v40 }
 0x899   :  { %v981_v49 = vmul.f32 %v979_v62, %v1863_v30 }
 0x89b   :  { %v2188_v60 = vsub.f32 %v2152_v3, %v981_v49  ;;  %v1096_v49 = vsel %vm1095_vm14, %v1670_v29, %v1092_v42 }
 0x89c   :  { %v1117_v53 = vmul.f32 %v1096_v49, %v2138_v16 }
 0x89d   :  { %v985_v7 = vmul.f32 %v2188_v60, %v2188_v60 }
 0x89f   :  { %990 = vrot.lane.b32.xlu2 %v985_v7, %s1746_s12  ;;  %v1100_v7 = vmul.f32 0.5, %v1099_v47 }
 0x8a0   :  { %v798_v10 = vpop.xlane.xlu1 %797 }
 0x8a1   :  { %v801_v9 = vmul.f32 %v798_v10, %v1863_v30  ;;  %v1101_v55 = vsub.f32 1.5, %v1100_v7 }
 0x8a3   :  { %v2209_v45 = vsub.f32 %v2096_v6, %v801_v9  ;;  %v1102_v2 = vmul.f32 %v1672_v8, %v1101_v55 }
 0x8a5   :  { %v807_v62 = vmul.f32 %v2209_v45, %v2209_v45 }
 0x8a7   :  { %v814_v21 = vsel %vm94_vm1, %v807_v62, 0.0 }
 0x8a8   :  { %v795_v14 = vpop.xlane.xlu1 %794 }
 0x8c0   :  { %v1027_v33 = vpop.permute.xlu1 %1026 }
 0x8c2   :  { %737 = vadd.xlane.f32.xlu0 %v736_v1  ;;  %v1120_v1 = vmul.f32 %v1117_v53, %v2177_v44 }
 0x8c4   :  { %v1123_v48 = vadd.f32 %v1120_v1, %v2200_v20 }
 0x8c8   :  { %791 = vadd.xlane.f32.xlu2 %v790_v59  ;;  %v1106_v59 = vsel %vm1105_vm4, %v1672_v8, %v1102_v2 }
 0x8c9   :  { %v1118_v13 = vmul.f32 %v1106_v59, %v2145_v22 }
 0x8cb   :  { %v1121_v12 = vmul.f32 %v1118_v13, %v2177_v44 }
 0x8cd   :  { %v1124_v16 = vadd.f32 %v1121_v12, %v2200_v20 }
 0x8e0   :  { %1139 = vrot.lane.b32.xlu2 %v1125_v26, %s1746_s12  ;;  %v800_v26 = vmul.f32 %v795_v14, %v1863_v30 }
 0x8e2   :  { %v2233_v22 = vsub.f32 %v2090_v36, %v800_v26 }
 0x8e4   :  { %v806_v35 = vmul.f32 %v2233_v22, %v2233_v22 }
 0x8e6   :  { %v811_v32 = vsel %vm94_vm1, %v806_v35, 0.0 }
 0x8eb   :  { %v2240_v10 = vpop.xlane.xlu1 %740 }
 0x8f9   :  { %v991_v34 = vpop.permute.xlu2 %990 }
 0x8fa   :  { %v997_v37 = vsel %vm94_vm1, %v991_v34, 0.0 }
 0x8fb   :  { %998 = vadd.xlane.f32.xlu1 %v997_v37 }
 0x909   :  { %815 = vadd.xlane.f32.xlu2 %v814_v21 }
 0x90a   :  { %v989_v51 = vpop.permute.xlu0 %988 }
 0x90b   :  { %v994_v0 = vsel %vm94_vm1, %v989_v51, 0.0 }
 0x90c   :  { %995 = vadd.xlane.f32.xlu0 %v994_v0 }
 0x914   :  { %1135 = vrot.lane.b32.xlu1 %v1123_v48, %s1746_s12 }
 0x920   :  { %1137 = vrot.lane.b32.xlu0 %v1124_v16, %s1746_s12 }
 0x935   :  { %v738_v8 = vpop.xlane.xlu0 %737 }
 0x93b   :  { %v792_v17 = vpop.xlane.xlu2 %791 }
 0x93c   :  { %v799_v19 = vmul.f32 %v792_v17, %v1863_v30 }
 0x93e   :  { %v2228_v4 = vsub.f32 %v2086_v43, %v799_v19 }
 0x940   :  { %v805_v5 = vmul.f32 %v2228_v4, %v2228_v4 }
 0x942   :  { %v808_v28 = vsel %vm94_vm1, %v805_v5, 0.0 }
 0x943   :  { %v1140_v29 = vpop.permute.xlu2 %1139  ;;  %809 = vadd.xlane.f32.xlu1 %v808_v28 }
 0x944   :  { %1551 = vmatpush.xpose.msk.msra.mxu1 %vm94_vm1, %v1140_v29 }
 0x94a   :  { %812 = vadd.xlane.f32.xlu0 %v811_v32 }
 0x96e   :  { %v999_v34 = vpop.xlane.xlu1 %998 }
 0x96f   :  { %v1001_v37 = vmul.f32 %v999_v34, %v1863_v30 }
 0x971   :  { %v1003_v38 = vadd.f32 1e-05, %v1001_v37 }
 0x973   :  { %1673 = vrsqrt.f32 %v1003_v38  ;;  %vm1020_vm6 = vweird.f32 %v1003_v38 }
 0x979   :  { %v1674_v9 = vpop.eup %1673 }
 0x97a   :  { %v1015_v39 = vmul.f32 %v1674_v9, %v1003_v38  ;;  %vm1021_vm5 = vweird.f32 %v1674_v9 }
 0x97b   :  { %vm1022_vm7 = vmor %vm1020_vm6, %vm1021_vm5 }
 0x97c   :  { %v1016_v40 = vmul.f32 %v1674_v9, %v1015_v39  ;;  %v816_v42 = vpop.xlane.xlu2 %815 }
 0x97d   :  { %v819_v47 = vmul.f32 %v816_v42, %v1863_v30 }
 0x97e   :  { %v1017_v62 = vmul.f32 0.5, %v1016_v40 }
 0x97f   :  { %v822_v49 = vadd.f32 1e-05, %v819_v47  ;;  %v996_v7 = vpop.xlane.xlu0 %995 }
 0x980   :  { %v1018_v21 = vsub.f32 1.5, %v1017_v62  ;;  %v1000_v51 = vmul.f32 %v996_v7, %v1863_v30 }
 0x981   :  { %1675 = vrsqrt.f32 %v822_v49  ;;  %vm849_vm9 = vweird.f32 %v822_v49 }
 0x982   :  { %v1019_v53 = vmul.f32 %v1674_v9, %v1018_v21  ;;  %v1002_v55 = vadd.f32 1e-05, %v1000_v51 }
 0x984   :  { %v1023_v0 = vsel %vm1022_vm7, %v1674_v9, %v1019_v53  ;;  %1677 = vrsqrt.f32 %v1002_v55  ;;  %vm1010_vm12 = vweird.f32 %v1002_v55 }
 0x985   :  { %v1025_v1 = vmul.f32 %v1023_v0, %v2188_v60 }
 0x986   :  { %v1136_v9 = vpop.permute.xlu1 %1135 }
 0x987   :  { %v1676_v2 = vpop.eup %1675  ;;  %v1030_v48 = vmul.f32 %v1027_v33, %v1025_v1 }
 0x988   :  { %v844_v59 = vmul.f32 %v1676_v2, %v822_v49  ;;  %vm850_vm8 = vweird.f32 %v1676_v2  ;;  %v742_v49 = vmul.f32 %v738_v8, %v1863_v30 }
 0x989   :  { %v1032_v13 = vadd.f32 %v1030_v48, %v2211_v31  ;;  %vm851_vm10 = vmor %vm849_vm9, %vm850_vm8 }
 0x98a   :  { %v1678_v12 = vpop.eup %1677  ;;  %v845_v16 = vmul.f32 %v1676_v2, %v844_v59 }
 0x98b   :  { %v1005_v14 = vmul.f32 %v1678_v12, %v1002_v55  ;;  %1130 = vrot.lane.b32.xlu2 %v1032_v13, %s1746_s12  ;;  %vm1011_vm11 = vweird.f32 %v1678_v12  ;;  %v743_v55 = vmul.f32 %v2240_v10, %v1863_v30 }
 0x98c   :  { %v846_v17 = vmul.f32 0.5, %v845_v16  ;;  %vm1012_vm13 = vmor %vm1010_vm12, %vm1011_vm11 }
 0x98d   :  { %v1006_v19 = vmul.f32 %v1678_v12, %v1005_v14  ;;  %v2268_v8 = vsub.f32 %v2152_v3, %v743_v55 }
 0x98e   :  { %v847_v26 = vsub.f32 1.5, %v846_v17 }
 0x98f   :  { %v1007_v5 = vmul.f32 0.5, %v1006_v19  ;;  %v747_v16 = vmul.f32 %v2268_v8, %v2268_v8 }
 0x990   :  { %v848_v28 = vmul.f32 %v1676_v2, %v847_v26 }
 0x991   :  { %v1008_v29 = vsub.f32 1.5, %v1007_v5  ;;  %v751_v19 = vsel %vm94_vm1, %v747_v16, 0.0 }
 0x992   :  { %v852_v60 = vsel %vm851_vm10, %v1676_v2, %v848_v28  ;;  %v1138_v35 = vpop.permute.xlu0 %1137 }
 0x993   :  { %v855_v32 = vmul.f32 %v852_v60, %v2209_v45  ;;  %v1009_v34 = vmul.f32 %v1678_v12, %v1008_v29  ;;  %1552 = vmatpush.xpose.msk.msra.mxu1 %vm94_vm1, %v1138_v35 }
 0x995   :  { %v861_v37 = vmul.f32 %v2200_v20, %v855_v32  ;;  %v1013_v38 = vsel %vm1012_vm13, %v1678_v12, %v1009_v34 }
 0x996   :  { %v1024_v39 = vmul.f32 %v1013_v38, %v2181_v15  ;;  %v2260_v15 = vsub.f32 %v2147_v23, %v742_v49 }
 0x997   :  { %1553 = vmatpush.xpose.msk.msra.mxu1 %vm94_vm1, %v1136_v9  ;;  %v864_v40 = vadd.f32 %v861_v37, %v1949_v18 }
 0x998   :  { %v1029_v42 = vmul.f32 %v1027_v33, %v1024_v39  ;;  %v746_v0 = vmul.f32 %v2260_v15, %v2260_v15 }
 0x999   :  { %1544 = vmatpush.xpose.msk.msra.mxu2 %vm94_vm1, %v864_v40 }
 0x99a   :  { %v1031_v45 = vadd.f32 %v1029_v42, %v2211_v31  ;;  %v748_v23 = vsel %vm94_vm1, %v746_v0, 0.0 }
 0x99c   :  { %1128 = vrot.lane.b32.xlu0 %v1031_v45, %s1746_s12  ;;  %s1757_s12 = smov 128  }
 0x9b6   :  { %v810_v47 = vpop.xlane.xlu1 %809 }
 0x9b7   :  { %v817_v62 = vmul.f32 %v810_v47, %v1863_v30 }
 0x9b9   :  { %v820_v7 = vadd.f32 1e-05, %v817_v62 }
 0x9bb   :  { %1679 = vrsqrt.f32 %v820_v7  ;;  %vm829_vm2 = vweird.f32 %v820_v7 }
 0x9bd   :  { %v813_v21 = vpop.xlane.xlu0 %812 }
 0x9be   :  { %v818_v51 = vmul.f32 %v813_v21, %v1863_v30 }
 0x9c0   :  { %v821_v33 = vadd.f32 1e-05, %v818_v51 }
 0x9c1   :  { %v1680_v53 = vpop.eup %1679 }
 0x9c2   :  { %v824_v1 = vmul.f32 %v1680_v53, %v820_v7  ;;  %1681 = vrsqrt.f32 %v821_v33  ;;  %vm830_vm14 = vweird.f32 %v1680_v53  ;;  %vm839_vm5 = vweird.f32 %v821_v33 }
 0x9c3   :  { %vm831_vm4 = vmor %vm829_vm2, %vm830_vm14 }
 0x9c4   :  { %v825_v2 = vmul.f32 %v1680_v53, %v824_v1 }
 0x9c6   :  { %v826_v48 = vmul.f32 0.5, %v825_v2  ;;  %749 = vadd.xlane.f32.xlu0 %v748_v23 }
 0x9c8   :  { %v1682_v59 = vpop.eup %1681  ;;  %v827_v13 = vsub.f32 1.5, %v826_v48 }
 0x9c9   :  { %v834_v12 = vmul.f32 %v1682_v59, %v821_v33  ;;  %vm840_vm3 = vweird.f32 %v1682_v59 }
 0x9ca   :  { %v828_v14 = vmul.f32 %v1680_v53, %v827_v13  ;;  %vm841_vm6 = vmor %vm839_vm5, %vm840_vm3 }
 0x9cb   :  { %v835_v10 = vmul.f32 %v1682_v59, %v834_v12 }
 0x9cc   :  { %v832_v26 = vsel %vm831_vm4, %v1680_v53, %v828_v14 }
 0x9cd   :  { %v836_v17 = vmul.f32 0.5, %v835_v10  ;;  %v853_v29 = vmul.f32 %v832_v26, %v2228_v4 }
 0x9ce   :  { %752 = vadd.xlane.f32.xlu0 %v751_v19 }
 0x9cf   :  { %v837_v3 = vsub.f32 1.5, %v836_v17  ;;  %v859_v34 = vmul.f32 %v2200_v20, %v853_v29 }
 0x9d1   :  { %v838_v5 = vmul.f32 %v1682_v59, %v837_v3  ;;  %v862_v37 = vadd.f32 %v859_v34, %v1949_v18 }
 0x9d3   :  { %v842_v28 = vsel %vm841_vm6, %v1682_v59, %v838_v5  ;;  %vm1422_vm6 = vcmask 523264  }
 0x9d4   :  { %v854_v60 = vmul.f32 %v842_v28, %v2233_v22 }
 0x9d6   :  { %v860_v35 = vmul.f32 %v2200_v20, %v854_v60 }
 0x9d8   :  { %v863_v32 = vadd.f32 %v860_v35, %v1949_v18 }
 0x9da   :  { %1545 = vmatpush.xpose.msk.msra.mxu2 %vm94_vm1, %v863_v32 }
 0x9de   :  { %1546 = vmatpush.xpose.msk.msra.mxu2 %vm94_vm1, %v862_v37 }
 0x9e5   :  { %v1131_v9 = vpop.permute.xlu2 %1130 }
 0xa0e   :  { %v1129_v38 = vpop.permute.xlu0 %1128 }
 0xa0f   :  { %1554 = vmatmul.msk.f32.vlgmr.msra.gmra.mxu1 %vm94_vm1, %v1129_v38 }
 0xa17   :  { %1555 = vmatmul.msk.f32.gmra.mxu1 %vm94_vm1, %v1131_v9 }
 0xa39   :  { %v750_v4 = vpop.xlane.xlu0 %749 }
 0xa3a   :  { %v754_v22 = vmul.f32 %v750_v4, %v1863_v30 }
 0xa3c   :  { %v756_v39 = vadd.f32 1e-05, %v754_v22 }
 0xa3e   :  { %1683 = vrsqrt.f32 %v756_v39  ;;  %vm764_vm8 = vweird.f32 %v756_v39 }
 0xa41   :  { %v753_v40 = vpop.xlane.xlu0 %752 }
 0xa42   :  { %v755_v20 = vmul.f32 %v753_v40, %v1863_v30 }
 0xa44   :  { %v1684_v42 = vpop.eup %1683  ;;  %v757_v45 = vadd.f32 1e-05, %v755_v20 }
 0xa45   :  { %v759_v47 = vmul.f32 %v1684_v42, %v756_v39  ;;  %vm765_vm7 = vweird.f32 %v1684_v42 }
 0xa46   :  { %1685 = vrsqrt.f32 %v757_v45  ;;  %vm766_vm9 = vmor %vm764_vm8, %vm765_vm7  ;;  %vm774_vm11 = vweird.f32 %v757_v45 }
 0xa47   :  { %v760_v18 = vmul.f32 %v1684_v42, %v759_v47 }
 0xa49   :  { %v761_v62 = vmul.f32 0.5, %v760_v18 }
 0xa4b   :  { %v762_v49 = vsub.f32 1.5, %v761_v62 }
 0xa4c   :  { %v1686_v7 = vpop.eup %1685 }
 0xa4d   :  { %v763_v21 = vmul.f32 %v1684_v42, %v762_v49  ;;  %v769_v51 = vmul.f32 %v1686_v7, %v757_v45  ;;  %vm775_vm10 = vweird.f32 %v1686_v7 }
 0xa4e   :  { %vm776_vm12 = vmor %vm774_vm11, %vm775_vm10 }
 0xa4f   :  { %v767_v33 = vsel %vm766_vm9, %v1684_v42, %v763_v21  ;;  %v770_v53 = vmul.f32 %v1686_v7, %v769_v51 }
 0xa50   :  { %v778_v55 = vmul.f32 %v767_v33, %v2260_v15  ;;  %v54_v15 = vmul.f32 0.083333336, %v1993_v54 }
 0xa51   :  { %v771_v0 = vmul.f32 0.5, %v770_v53 }
 0xa52   :  { %v783_v30 = vmul.f32 %v2211_v31, %v778_v55  ;;  %v55_v16 = vfloor.f32 %v54_v15 }
 0xa53   :  { %v772_v1 = vsub.f32 1.5, %v771_v0 }
 0xa54   :  { %v788_v2 = vadd.f32 %v2177_v44, %v783_v30  ;;  %vm56_vm13 = vcmp.eq.f32.partialorder %v45_v58, %v55_v16  ;;  %vm57_vm14 = vcmp.eq.f32.partialorder %v46_v11, %v55_v16  ;;  %v1612_v16 = vpack.i.bf16 %v2047_v27, %v2039_v25 }
 0xa55   :  { %v773_v23 = vmul.f32 %v1686_v7, %v772_v1  ;;  %v58_v10 = vsel %vm56_vm13, 0.0, %v1751_v63 }
 0xa56   :  { %1547 = vmatmul.msk.f32.vlgmr.msra.gmra.mxu2 %vm94_vm1, %v788_v2 }
 0xa57   :  { %v777_v48 = vsel %vm776_vm12, %v1686_v7, %v773_v23 }
 0xa58   :  { %v779_v59 = vmul.f32 %v777_v48, %v2268_v8 }
 0xa5a   :  { %v784_v13 = vmul.f32 %v2211_v31, %v779_v59 }
 0xa5c   :  { %v789_v12 = vadd.f32 %v2177_v44, %v784_v13  ;;  %v59_v44 = vsel %vm57_vm14, 0.0, %v1751_v63 }
 0xa5e   :  { %1548 = vmatmul.msk.f32.gmra.mxu2 %vm94_vm1, %v789_v12 }
 0xa8c   :  { %v1168_v14 = vpop.f32.mrf.mxu1 }
 0xa8d   :  { %v1169_v17 = vadd.f32 %v1168_v14, %v58_v10 }
 0xa8f   :  { %v1174_v19 = vsel %vm700_vm15, %v1169_v17, -inf }
 0xa90   :  { %1175 = vmax.xlane.f32.xlu1 %v1174_v19 }
 0xa94   :  { %v1171_v31 = vpop.f32.mrf.mxu1 }
 0xa95   :  { %v1172_v8 = vadd.f32 %v1171_v31, %v59_v44 }
 0xa97   :  { %v1177_v54 = vsel %vm700_vm15, %v1172_v8, -inf }
 0xa98   :  { %1178 = vmax.xlane.f32.xlu2 %v1177_v54 }
 0xab0   :  { %1603 = vrot.lane.b32.xlu2 %v1602_v56, %s1748_s0 }
 0xab8   :  { %928 = vrot.lane.b32.xlu2 %v2086_v43, %s1748_s0 }
 0xad9   :  { %v897_v58 = vpop.f32.mrf.mxu2 }
 0xada   :  { %v898_v3 = vadd.f32 %v897_v58, %v58_v10 }
 0xadc   :  { %v903_v61 = vsel %vm700_vm15, %v898_v3, -inf }
 0xadd   :  { %904 = vmax.xlane.f32.xlu0 %v903_v61 }
 0xae1   :  { %v900_v11 = vpop.f32.mrf.mxu2 }
 0xae2   :  { %v901_v63 = vadd.f32 %v900_v11, %v59_v44 }
 0xae4   :  { %v906_v26 = vsel %vm700_vm15, %v901_v63, -inf }
 0xae5   :  { %907 = vmax.xlane.f32.xlu0 %v906_v26 }
 0xb03   :  { %v1176_v5 = vpop.xlane.xlu1 %1175 }
 0xb04   :  { %v1180_v28 = vsub.f32 %v1169_v17, %v1176_v5 }
 0xb06   :  { %v1182_v29 = vmul.f32 1.442695, %v1180_v28 }
 0xb08   :  { %1687 = vpow2.f32 %v1182_v29 }
 0xb0b   :  { %v1179_v36 = vpop.xlane.xlu2 %1178 }
 0xb0c   :  { %v1181_v6 = vsub.f32 %v1172_v8, %v1179_v36 }
 0xb0e   :  { %v1688_v60 = vpop.eup %1687  ;;  %v1184_v35 = vmul.f32 1.442695, %v1181_v6  ;;  %v1715_v6 = vld [vmem:[%s2421_s4 + $0x8] sm:$0xff] }
 0xb0f   :  { %v1186_v32 = vsel %vm700_vm15, %v1688_v60, 0.0 }
 0xb10   :  { %1689 = vpow2.f32 %v1184_v35  ;;  %1187 = vadd.xlane.f32.xlu1 %v1186_v32 }
 0xb13   :  { %v1604_v34 = vpop.permute.xlu2 %1603 }
 0xb14   :  { %v1605_v37 = vunpack.i.l.bf16 %v1604_v34  ;;  %v1606_v9 = vunpack.i.h.bf16 %v1604_v34 }
 0xb16   :  { %v1690_v38 = vpop.eup %1689  ;;  %956 = vmatpush.msra.mxu0 %v1605_v37 }
 0xb17   :  { %v1189_v4 = vsel %vm700_vm15, %v1690_v38, 0.0 }
 0xb18   :  { %957 = vmatpush.msra.mxu0 %v1606_v9  ;;  %1190 = vadd.xlane.f32.xlu0 %v1189_v4 }
 0xb1b   :  { %v929_v22 = vpop.permute.xlu2 %928 }
 0xb1c   :  { %958 = vmatpush.msra.mxu0 %v929_v22 }
 0xb29   :  { %1598 = vrot.lane.b32.xlu1 %v1602_v56, %s1747_s13 }
 0xb2c   :  { %1196 = vrot.lane.b32.xlu0 %v2086_v43, %s1747_s13  ;;  %s1758_s13 = smov 8  }
 0xb50   :  { %v905_v39 = vpop.xlane.xlu0 %904 }
 0xb51   :  { %v909_v40 = vsub.f32 %v898_v3, %v905_v39 }
 0xb53   :  { %v911_v20 = vmul.f32 1.442695, %v909_v40  ;;  %v1717_v40 = vld [vmem:[%s2423_s6] sm:$0xf] }
 0xb55   :  { %1691 = vpow2.f32 %v911_v20  ;;  %v2353_v20 = vperm.slane %v1717_v40, 2 }
 0xb58   :  { %v908_v42 = vpop.xlane.xlu0 %907 }
 0xb59   :  { %v910_v45 = vsub.f32 %v901_v63, %v908_v42  ;;  %v1718_v42 = vld [vmem:[%s2421_s4 + $0x18] sm:$0xff] }
 0xb5b   :  { %v1692_v47 = vpop.eup %1691  ;;  %v913_v18 = vmul.f32 1.442695, %v910_v45  ;;  %v1719_v45 = vld [vmem:[%s2421_s4 + $0x10] sm:$0xff] }
 0xb5c   :  { %v915_v62 = vsel %vm700_vm15, %v1692_v47, 0.0 }
 0xb5d   :  { %1693 = vpow2.f32 %v913_v18  ;;  %916 = vadd.xlane.f32.xlu1 %v915_v62 }
 0xb63   :  { %v1694_v49 = vpop.eup %1693 }
 0xb64   :  { %v918_v7 = vsel %vm700_vm15, %v1694_v49, 0.0 }
 0xb65   :  { %919 = vadd.xlane.f32.xlu0 %v918_v7  ;;  %v2367_v7 = vperm.slane %v1717_v40, 3 }
 0xb79   :  { %1260 = vrot.lane.b32.xlu0 %v2076_v41, %s1754_s1  ;;  %v1607_v41 = vpack.i.bf16 %v2033_v50, %v2028_v24 }
 0xb7b   :  { %1608 = vrot.lane.b32.xlu2 %v1607_v41, %s1748_s0 }
 0xb83   :  { %v1188_v43 = vpop.xlane.xlu1 %1187  ;;  %1613 = vrot.lane.b32.xlu2 %v1612_v16, %s1748_s0 }
 0xb84   :  { %1695 = vrcp.f32 %v1188_v43 }
 0xb8a   :  { %v1696_v53 = vpop.eup %1695 }
 0xb8b   :  { %v1191_v21 = vpop.xlane.xlu0 %1190  ;;  %v1194_v0 = vmul.f32 %v1696_v53, %v1688_v60  ;;  %v1716_v60 = vld [vmem:[%s2421_s4] sm:$0xff] }
 0xb8c   :  { %1697 = vrcp.f32 %v1191_v21  ;;  %v1622_v35 = vpack.i.bf16 %v1716_v60, %v1715_v6 }
 0xb92   :  { %v1698_v1 = vpop.eup %1697 }
 0xb93   :  { %v1195_v2 = vmul.f32 %v1698_v1, %v1690_v38 }
 0xb9b   :  { %v1599_v51 = vpop.permute.xlu1 %1598 }
 0xb9c   :  { %v1600_v33 = vunpack.i.l.bf16 %v1599_v51  ;;  %v1601_v55 = vunpack.i.h.bf16 %v1599_v51 }
 0xb9e   :  { %1224 = vmatpush.msra.mxu3 %v1600_v33  ;;  %v1197_v30 = vpop.permute.xlu0 %1196 }
 0xba0   :  { %1225 = vmatpush.msra.mxu3 %v1601_v55 }
 0xba2   :  { %1226 = vmatpush.msra.mxu3 %v1197_v30 }
 0xba3   :  { %1556 = vmatmul.msk.f32.vlgmr.msra.gmra.mxu3 %vm700_vm15, %v1194_v0 }
 0xbab   :  { %1557 = vmatmul.msk.f32.gmra.mxu3 %vm700_vm15, %v1195_v2 }
 0xbd0   :  { %v917_v23 = vpop.xlane.xlu1 %916 }
 0xbd1   :  { %1699 = vrcp.f32 %v917_v23 }
 0xbd5   :  { %v1609_v10 = vpop.permute.xlu2 %1608 }
 0xbd6   :  { %v1611_v14 = vunpack.i.h.bf16 %v1609_v10  ;;  %v1610_v17 = vunpack.i.l.bf16 %v1609_v10 }
 0xbd7   :  { %v1700_v48 = vpop.eup %1699 }
 0xbd8   :  { %v923_v59 = vmul.f32 %v1700_v48, %v1692_v47  ;;  %v920_v13 = vpop.xlane.xlu0 %919  ;;  %1281 = vmatpush.msrb.mxu2 %v1610_v17  ;;  %v1617_v47 = vpack.i.bf16 %v1719_v45, %v1718_v42 }
 0xbd9   :  { %1701 = vrcp.f32 %v920_v13 }
 0xbda   :  { %1549 = vmatmul.msk.f32.vlgmr.msra.gmra.mxu0 %vm700_vm15, %v923_v59  ;;  %1282 = vmatpush.msrb.mxu2 %v1611_v14 }
 0xbdd   :  { %v1614_v19 = vpop.permute.xlu2 %1613 }
 0xbde   :  { %v1616_v44 = vunpack.i.h.bf16 %v1614_v19  ;;  %v1615_v31 = vunpack.i.l.bf16 %v1614_v19 }
 0xbdf   :  { %v1702_v12 = vpop.eup %1701 }
 0xbe0   :  { %v924_v15 = vmul.f32 %v1702_v12, %v1694_v49  ;;  %1283 = vmatpush.msrb.mxu2 %v1615_v31 }
 0xbe2   :  { %1550 = vmatmul.msk.f32.gmra.mxu0 %vm700_vm15, %v924_v15  ;;  %1284 = vmatpush.msrb.mxu2 %v1616_v44 }
 0xbeb   :  { %v1261_v3 = vpop.permute.xlu0 %1260 }
 0xc26   :  { %v1228_v24 = vpop.f32.mrf.mxu3 }
 0xc27   :  { %1236 = vrot.lane.b32.xlu1 %v1228_v24, %s1750_s16 }
 0xc2e   :  { %v1231_v50 = vpop.f32.mrf.mxu3 }
 0xc2f   :  { %1238 = vrot.lane.b32.xlu2 %v1231_v50, %s1750_s16 }
 0xc57   :  { %v960_v8 = vpop.f32.mrf.mxu0 }
 0xc5f   :  { %v963_v56 = vpop.f32.mrf.mxu0 }
 0xc89   :  { %v1239_v54 = vpop.permute.xlu2 %1238 }
 0xc8a   :  { %v1243_v58 = vsel %vm94_vm1, %v963_v56, %v1239_v54  ;;  %v1418_v56 = vld [vmem:[%s2422_s5 + $0x38] sm:$0xff] }
 0xc8b   :  { %1437 = vmatpush.msrb.mxu1 %v1418_v56 }
 0xc99   :  { %v1237_v25 = vpop.permute.xlu1 %1236 }
 0xc9a   :  { %v1242_v27 = vsel %vm94_vm1, %v960_v8, %v1237_v25 }
 0xc9b   :  { %1558 = vmatmul.msk.f32.vlgmr.msrb.gmra.mxu2 %vm64_vm0, %v1242_v27 }
 0xca3   :  { %1559 = vmatmul.msk.f32.gmra.mxu2 %vm64_vm0, %v1243_v58  ;;  %v1417_v58 = vld [vmem:[%s2422_s5 + $0x30] sm:$0xff] }
 0xca4   :  { %1438 = vmatpush.msrb.mxu1 %v1417_v58 }
 0xd1e   :  { %v1286_v61 = vpop.f32.mrf.mxu2 }
 0xd1f   :  { %v1287_v11 = vadd.f32 %v1286_v61, %v1261_v3  ;;  %v1415_v61 = vld [vmem:[%s2422_s5 + $0x20] sm:$0xff] }
 0xd21   :  { %v1292_v63 = vadd.f32 %v1287_v11, %v2120_v52  ;;  %v1414_v11 = vld [vmem:[%s2422_s5 + $0x18] sm:$0xff] }
 0xd23   :  { %v1294_v26 = vsel %vm64_vm0, %v1292_v63, 0.0 }
 0xd24   :  { %1295 = vadd.xlane.f32.xlu2 %v1294_v26  ;;  %v1412_v26 = vld [vmem:[%s2422_s5 + $0x8] sm:$0xff] }
 0xd26   :  { %v1289_v5 = vpop.f32.mrf.mxu2 }
 0xd27   :  { %v1290_v28 = vadd.f32 %v1289_v5, %v1261_v3  ;;  %v1416_v3 = vld [vmem:[%s2422_s5 + $0x28] sm:$0xff]  ;;  %v1411_v5 = vld [vmem:[%s2422_s5] sm:$0xff] }
 0xd28   :  { %1439 = vmatpush.msrb.mxu1 %v1416_v3 }
 0xd29   :  { %v1293_v29 = vadd.f32 %v1290_v28, %v2124_v57 }
 0xd2a   :  { %1440 = vmatpush.msrb.mxu1 %v1415_v61 }
 0xd2b   :  { %v1297_v36 = vsel %vm64_vm0, %v1293_v29, 0.0 }
 0xd2c   :  { %1298 = vadd.xlane.f32.xlu1 %v1297_v36  ;;  %1441 = vmatpush.msrb.mxu1 %v1414_v11 }
 0xd45   :  { %1623 = vrot.lane.b32.xlu1 %v1622_v35, %s1752_s17 }
 0xd97   :  { %v1296_v52 = vpop.xlane.xlu2 %1295 }
 0xd98   :  { %v1300_v32 = vmul.f32 %v1296_v52, %v2102_v46 }
 0xd9a   :  { %v1302_v34 = vsub.f32 %v1292_v63, %v1300_v32  ;;  %v1413_v63 = vld [vmem:[%s2422_s5 + $0x10] sm:$0xff]  ;;  %s1756_s5 = smov [#allocation2]  }
 0xd9b   :  { %1442 = vmatpush.msrb.mxu1 %v1413_v63  ;;  %s1509_s15 = sshll.u32 %s1756_s5, 4  ;;  %s1510_s15 = int_to_ptr.vmem [resolvable:$true] %s1509_s15 }
 0xd9c   :  { %v1304_v37 = vmul.f32 %v1302_v34, %v1302_v34 }
 0xd9d   :  { %1443 = vmatpush.msrb.mxu1 %v1412_v26 }
 0xd9e   :  { %v1306_v57 = vsel %vm64_vm0, %v1304_v37, 0.0 }
 0xd9f   :  { %v1299_v38 = vpop.xlane.xlu1 %1298  ;;  %1307 = vadd.xlane.f32.xlu0 %v1306_v57  ;;  %1444 = vmatpush.msrb.mxu1 %v1411_v5 }
 0xda0   :  { %v1301_v9 = vmul.f32 %v1299_v38, %v2102_v46 }
 0xda2   :  { %v1303_v4 = vsub.f32 %v1293_v29, %v1301_v9 }
 0xda4   :  { %v1305_v22 = vmul.f32 %v1303_v4, %v1303_v4 }
 0xda6   :  { %v1309_v39 = vsel %vm64_vm0, %v1305_v22, 0.0 }
 0xda7   :  { %1310 = vadd.xlane.f32.xlu2 %v1309_v39 }
 0xdb3   :  { %1342 = vrot.lane.b32.xlu0 %v2353_v20, %s1748_s0 }
 0xdb7   :  { %v1624_v1 = vpop.permute.xlu1 %1623 }
 0xdb8   :  { %v1625_v59 = vunpack.i.l.bf16 %v1624_v1  ;;  %v1626_v15 = vunpack.i.h.bf16 %v1624_v1 }
 0xdbb   :  { %1419 = vrot.lane.b32.xlu0 %v2353_v20, %s1752_s17 }
 0xdbf   :  { %1618 = vrot.lane.b32.xlu2 %v1617_v47, %s1752_s17 }
 0xdc7   :  { %1361 = vrot.lane.b32.xlu2 %v2367_v7, %s1748_s0 }
 0xe12   :  { %v1308_v18 = vpop.xlane.xlu0 %1307 }
 0xe13   :  { %v1312_v62 = vmul.f32 %v1308_v18, %v2102_v46 }
 0xe15   :  { %v1314_v49 = vadd.f32 1e-05, %v1312_v62 }
 0xe17   :  { %1703 = vrsqrt.f32 %v1314_v49  ;;  %vm1322_vm15 = vweird.f32 %v1314_v49 }
 0xe1a   :  { %v1311_v43 = vpop.xlane.xlu2 %1310 }
 0xe1b   :  { %v1313_v21 = vmul.f32 %v1311_v43, %v2102_v46 }
 0xe1d   :  { %v1704_v51 = vpop.eup %1703  ;;  %v1315_v33 = vadd.f32 1e-05, %v1313_v21 }
 0xe1e   :  { %v1317_v53 = vmul.f32 %v1704_v51, %v1314_v49  ;;  %vm1323_vm1 = vweird.f32 %v1704_v51 }
 0xe1f   :  { %1705 = vrsqrt.f32 %v1315_v33  ;;  %vm1324_vm2 = vmor %vm1322_vm15, %vm1323_vm1  ;;  %vm1332_vm4 = vweird.f32 %v1315_v33 }
 0xe20   :  { %v1318_v55 = vmul.f32 %v1704_v51, %v1317_v53 }
 0xe22   :  { %v1319_v0 = vmul.f32 0.5, %v1318_v55  ;;  %v1619_v30 = vpop.permute.xlu2 %1618 }
 0xe23   :  { %v1621_v2 = vunpack.i.h.bf16 %v1619_v30  ;;  %v1620_v41 = vunpack.i.l.bf16 %v1619_v30 }
 0xe24   :  { %v1320_v23 = vsub.f32 1.5, %v1319_v0 }
 0xe25   :  { %v1706_v48 = vpop.eup %1705  ;;  %1382 = vmatpush.msrb.mxu0 %v1620_v41  ;;  %v1343_v14 = vpop.permute.xlu0 %1342 }
 0xe26   :  { %v1321_v13 = vmul.f32 %v1704_v51, %v1320_v23  ;;  %v1327_v12 = vmul.f32 %v1706_v48, %v1315_v33  ;;  %vm1333_vm3 = vweird.f32 %v1706_v48 }
 0xe27   :  { %1383 = vmatpush.msrb.mxu0 %v1621_v2  ;;  %vm1334_vm5 = vmor %vm1332_vm4, %vm1333_vm3 }
 0xe28   :  { %v1328_v16 = vmul.f32 %v1706_v48, %v1327_v12  ;;  %v1325_v24 = vsel %vm1324_vm2, %v1704_v51, %v1321_v13 }
 0xe29   :  { %v1336_v50 = vmul.f32 %v1325_v24, %v1302_v34  ;;  %1384 = vmatpush.msrb.mxu0 %v1625_v59 }
 0xe2a   :  { %v1329_v10 = vmul.f32 0.5, %v1328_v16  ;;  %v1362_v28 = vpop.permute.xlu2 %1361 }
 0xe2b   :  { %v1339_v17 = vmul.f32 %v2353_v20, %v1336_v50  ;;  %1385 = vmatpush.msrb.mxu0 %v1626_v15 }
 0xe2c   :  { %v1330_v19 = vsub.f32 1.5, %v1329_v10 }
 0xe2d   :  { %v1345_v44 = vadd.f32 %v1343_v14, %v1339_v17  ;;  %v1420_v43 = vpop.permute.xlu0 %1419 }
 0xe2e   :  { %v1331_v31 = vmul.f32 %v1706_v48, %v1330_v19 }
 0xe2f   :  { %1560 = vmatmul.msk.f32.vlgmr.msrb.gmra.mxu0 %vm64_vm0, %v1345_v44 }
 0xe30   :  { %v1335_v8 = vsel %vm1334_vm5, %v1706_v48, %v1331_v31 }
 0xe31   :  { %v1337_v25 = vmul.f32 %v1335_v8, %v1303_v4 }
 0xe33   :  { %v1340_v27 = vmul.f32 %v2353_v20, %v1337_v25 }
 0xe35   :  { %v1346_v54 = vadd.f32 %v1343_v14, %v1340_v27 }
 0xe37   :  { %1561 = vmatmul.msk.f32.gmra.mxu0 %vm64_vm0, %v1346_v54 }
 0xeac   :  { %v1387_v29 = vpop.f32.mrf.mxu0 }
 0xead   :  { %v1388_v36 = vadd.f32 %v1387_v29, %v1362_v28 }
 0xeaf   :  { %v1393_v6 = vmul.f32 %v1388_v36, %v1388_v36 }
 0xeb1   :  { %v1395_v60 = vmul.f32 %v1393_v6, %v1388_v36 }
 0xeb3   :  { %v1397_v35 = vmul.f32 0.044715, %v1395_v60 }
 0xeb4   :  { %v1390_v52 = vpop.f32.mrf.mxu0 }
 0xeb5   :  { %v1399_v32 = vadd.f32 %v1397_v35, %v1388_v36  ;;  %v1391_v34 = vadd.f32 %v1390_v52, %v1362_v28 }
 0xeb7   :  { %v1401_v37 = vmul.f32 0.7978846, %v1399_v32  ;;  %v1394_v57 = vmul.f32 %v1391_v34, %v1391_v34 }
 0xeb9   :  { %1707 = vtanh.f32 %v1401_v37  ;;  %v1396_v38 = vmul.f32 %v1394_v57, %v1391_v34 }
 0xebb   :  { %v1398_v9 = vmul.f32 0.044715, %v1396_v38 }
 0xebd   :  { %v1400_v4 = vadd.f32 %v1398_v9, %v1391_v34 }
 0xebf   :  { %v1708_v22 = vpop.eup %1707  ;;  %v1402_v39 = vmul.f32 0.7978846, %v1400_v4 }
 0xec0   :  { %v1405_v40 = vadd.f32 1.0, %v1708_v22 }
 0xec1   :  { %1709 = vtanh.f32 %v1402_v39 }
 0xec2   :  { %v1407_v42 = vmul.f32 0.5, %v1405_v40 }
 0xec4   :  { %v1409_v45 = vmul.f32 %v1407_v42, %v1388_v36 }
 0xec6   :  { %1562 = vmatmul.msk.f32.vlgmr.msrb.gmra.mxu1 %vm1422_vm6, %v1409_v45 }
 0xec7   :  { %v1710_v47 = vpop.eup %1709 }
 0xec8   :  { %v1406_v18 = vadd.f32 1.0, %v1710_v47 }
 0xeca   :  { %v1408_v62 = vmul.f32 0.5, %v1406_v18 }
 0xecc   :  { %v1410_v49 = vmul.f32 %v1408_v62, %v1391_v34 }
 0xece   :  { %1563 = vmatmul.msk.f32.gmra.mxu1 %vm1422_vm6, %v1410_v49 }
 0xf43   :  { %v1446_v21 = vpop.f32.mrf.mxu1 }
 0xf44   :  { %v1447_v51 = vadd.f32 %v1446_v21, %v1420_v43 }
 0xf46   :  { %v1452_v33 = vsel %vm64_vm0, %v1447_v51, 0.0 }
 0xf47   :  { %1453 = vadd.xlane.f32.xlu1 %v1452_v33 }
 0xf4b   :  { %v1449_v53 = vpop.f32.mrf.mxu1 }
 0xf4c   :  { %v1450_v55 = vadd.f32 %v1449_v53, %v1420_v43 }
 0xf4e   :  { %v1455_v0 = vsel %vm64_vm0, %v1450_v55, 0.0 }
 0xf4f   :  { %1456 = vadd.xlane.f32.xlu2 %v1455_v0 }
 0xf67   :  { %1496 = vrot.lane.b32.xlu2 %v2353_v20, %s1754_s1 }
 0xfba   :  { %v1454_v30 = vpop.xlane.xlu1 %1453 }
 0xfbb   :  { %v1458_v1 = vmul.f32 %v1454_v30, %v2102_v46 }
 0xfbd   :  { %v1460_v2 = vsub.f32 %v1447_v51, %v1458_v1 }
 0xfbf   :  { %v1462_v41 = vmul.f32 %v1460_v2, %v1460_v2 }
 0xfc1   :  { %v1464_v23 = vsel %vm64_vm0, %v1462_v41, 0.0 }
 0xfc2   :  { %v1457_v48 = vpop.xlane.xlu2 %1456  ;;  %1465 = vadd.xlane.f32.xlu0 %v1464_v23 }
 0xfc3   :  { %v1459_v59 = vmul.f32 %v1457_v48, %v2102_v46 }
 0xfc5   :  { %v1461_v13 = vsub.f32 %v1450_v55, %v1459_v59 }
 0xfc7   :  { %v1463_v12 = vmul.f32 %v1461_v13, %v1461_v13 }
 0xfc9   :  { %v1467_v15 = vsel %vm64_vm0, %v1463_v12, 0.0 }
 0xfca   :  { %1468 = vadd.xlane.f32.xlu1 %v1467_v15  ;;  %v1497_v58 = vpop.permute.xlu2 %1496 }
0x1035   :  { %v1466_v16 = vpop.xlane.xlu0 %1465 }
0x1036   :  { %v1470_v24 = vmul.f32 %v1466_v16, %v2102_v46 }
0x1038   :  { %v1472_v20 = vadd.f32 1e-05, %v1470_v24 }
0x103a   :  { %1711 = vrsqrt.f32 %v1472_v20  ;;  %vm1480_vm8 = vweird.f32 %v1472_v20 }
0x103d   :  { %v1469_v50 = vpop.xlane.xlu1 %1468 }
0x103e   :  { %v1471_v10 = vmul.f32 %v1469_v50, %v2102_v46 }
0x1040   :  { %v1712_v14 = vpop.eup %1711  ;;  %v1473_v17 = vadd.f32 1e-05, %v1471_v10 }
0x1041   :  { %v1475_v19 = vmul.f32 %v1712_v14, %v1472_v20  ;;  %vm1481_vm7 = vweird.f32 %v1712_v14 }
0x1042   :  { %1713 = vrsqrt.f32 %v1473_v17  ;;  %vm1482_vm9 = vmor %vm1480_vm8, %vm1481_vm7  ;;  %vm1490_vm11 = vweird.f32 %v1473_v17 }
0x1043   :  { %v1476_v44 = vmul.f32 %v1712_v14, %v1475_v19 }
0x1045   :  { %v1477_v31 = vmul.f32 0.5, %v1476_v44 }
0x1047   :  { %v1478_v8 = vsub.f32 1.5, %v1477_v31 }
0x1048   :  { %v1714_v25 = vpop.eup %1713 }
0x1049   :  { %v1485_v27 = vmul.f32 %v1714_v25, %v1473_v17  ;;  %v1479_v54 = vmul.f32 %v1712_v14, %v1478_v8  ;;  %vm1491_vm10 = vweird.f32 %v1714_v25 }
0x104a   :  { %vm1492_vm12 = vmor %vm1490_vm11, %vm1491_vm10 }
0x104b   :  { %v1486_v56 = vmul.f32 %v1714_v25, %v1485_v27  ;;  %v1483_v3 = vsel %vm1482_vm9, %v1712_v14, %v1479_v54 }
0x104c   :  { %v1494_v61 = vmul.f32 %v1483_v3, %v1460_v2 }
0x104d   :  { %v1487_v11 = vmul.f32 0.5, %v1486_v56 }
0x104e   :  { %v1499_v63 = vmul.f32 %v1497_v58, %v1494_v61 }
0x104f   :  { %v1488_v46 = vsub.f32 1.5, %v1487_v11 }
0x1050   :  { %v1501_v26 = vadd.f32 %v1499_v63, %v2367_v7 }
0x1051   :  { %v1489_v5 = vmul.f32 %v1714_v25, %v1488_v46 }
0x1052   :  { %1503 = vst.msk [vmem:[#allocation2] sm:$0xff] %vm64_vm0, %v1501_v26 }
0x1053   :  { %v1493_v28 = vsel %vm1492_vm12, %v1714_v25, %v1489_v5 }
0x1054   :  { %v1495_v29 = vmul.f32 %v1493_v28, %v1461_v13 }
0x1056   :  { %v1500_v36 = vmul.f32 %v1497_v58, %v1495_v29 }
0x1058   :  { %v1502_v6 = vadd.f32 %v1500_v36, %v2367_v7 }
0x105a   :  { %1504 = vst.msk [vmem:[#allocation2 + $0x8] sm:$0xff] %vm64_vm0, %v1502_v6 }
0x105b   :  { %1517 = dma.vmem_to_hbm [thread:$0]  %s1510_s15, 256, %s1512_s3, [#allocation3], %s1757_s12, %s1757_s12, %s1758_s13  }
0x105c   :  { %1744 = dma.done.wait [#allocation3], 256  }
0x105d   :  { %1745 = vsyncadd [#allocation3], 4294967040 }
0x105e   :  { %1522 = vsyncpa [#allocation3], 1 }

</bundles_post_ra>
